<compile_context>
chip_gen: v7x
topology: tpu7x:2x2x1
jax: 0.10.0
libtpu: 0.0.40
codegen_flags: <defaults>
</compile_context>

<pallas_src>
import jax
import jax.numpy as jnp
from jax.experimental import pallas as pl
from jax.experimental.pallas import tpu as pltpu


def _full_spec(shape):
    zeros = (0,) * len(shape)
    return pl.BlockSpec(shape, lambda i: zeros)


# ---------------------------------------------------------------------------------
# One-time parameter packing (hoisted out of the per-call path per the review).
# ---------------------------------------------------------------------------------
def prepare_params(params, N, Cin, H, W, matmul_dtype=jnp.bfloat16):
    f32 = jnp.float32
    KH, KW, _, Cout = params['lk_w'].shape
    ph, pw = KH // 2, KW // 2
    WCin, WCout = W * Cin, W * Cout
    NH = N * H
    J = 2 * WCout

    # Compact width-Toeplitz slabs, one per ky: (W*Cin, W*Cout).  Width zero-padding is
    # encoded as missing taps of the band (no padded scratch / no masked lane stores).
    v = jnp.arange(W)
    kx = v[:, None] - v[None, :] + pw                              # tap index per (v, w)
    valid = ((kx >= 0) & (kx < KW)).astype(f32)
    kx_c = jnp.clip(kx, 0, KW - 1)
    lk_w = params['lk_w'].astype(f32)                              # (KH, KW, Cin, Cout)
    T = lk_w[:, kx_c] * valid[None, :, :, None, None]              # (KH, v, w, Cin, Cout)
    T = jnp.transpose(T, (0, 1, 3, 2, 4)).reshape(KH, WCin, WCout)

    # Height-shift 0/1 selection matrices stacked over ky, plus (last NH rows) the
    # per-image avg-pool row-sum matrix.  0/1 entries are exact in bf16.
    h = jnp.arange(H)
    ky = jnp.arange(KH)
    hs_small = (h[None, :, None] + (ky - ph)[:, None, None] == h[None, None, :]).astype(f32)
    eye_n = jnp.eye(N, dtype=f32)
    HS = jnp.einsum('ab,khj->kahbj', eye_n, hs_small).reshape(KH, NH, NH)
    pool = jnp.kron(eye_n, jnp.ones((H, H), f32))                  # sums rows within each n
    sel = jnp.concatenate([HS.reshape(KH * NH, NH), pool], axis=0)  # (KH*NH + NH, NH)

    # Residual 1x1 conv weight/bias in the block output layout:
    #   lane j = a*W*Cout + w*Cout + co  <->  channel a*Cout + co at width w.
    res_w = params['res_w'].astype(f32)                            # (Cin, 2*Cout)
    eye_w = jnp.eye(W, dtype=f32)
    rw = jnp.concatenate([jnp.kron(eye_w, res_w[:, :Cout]),
                          jnp.kron(eye_w, res_w[:, Cout:])], axis=1)          # (W*Cin, J)
    rb = jnp.concatenate([jnp.tile(params['res_b'][:Cout].astype(f32), W),
                          jnp.tile(params['res_b'][Cout:].astype(f32), W)])   # (J,)

    # Global 1x1 conv weight, tiled over (w_in, w_out) with the 1/(H*W) pooling factor
    # folded in.  The biases lk_b / g_b are dropped: a per-channel constant added before
    # a training-mode BatchNorm is an exact no-op.
    gw = jnp.tile(params['g_w'].astype(f32) / float(H * W), (W, W))  # (W*Cin, W*Cout)

    # Channel-sum / channel-tile matrices for the batched BN stat / scale matmuls.
    csum_half = jnp.tile(jnp.eye(Cout, dtype=f32), (W, 1))           # (W*Cout, Cout)
    csum = jnp.kron(jnp.eye(2, dtype=f32), csum_half)                # (J, 2*Cout)
    ctile = csum.T                                                   # (2*Cout, J)

    # Small per-channel vectors packed into one (8, J) slab (fewer DMA descriptors).
    vecs = jnp.zeros((8, J), f32)
    vecs = vecs.at[0, :Cout].set(params['bn1_g'].astype(f32))
    vecs = vecs.at[1, :Cout].set(params['bn1_b'].astype(f32))
    vecs = vecs.at[2, :2 * Cout].set(params['bn2_g'].astype(f32))
    vecs = vecs.at[3, :2 * Cout].set(params['bn2_b'].astype(f32))
    vecs = vecs.at[4, :].set(rb)

    return {
        'T': T.astype(matmul_dtype),
        'sel': sel.astype(matmul_dtype),
        'rw': rw.astype(matmul_dtype),
        'gw': gw.astype(matmul_dtype),
        'csum': csum,
        'ctile': ctile,
        'vecs': vecs,
    }


# ---------------------------------------------------------------------------------
# Fused forward pass.
# ---------------------------------------------------------------------------------
def context_aware_feature_aggregation(x_nchw, prep, eps=1e-5):
    """x_nchw: (N, Cin, H, W) -> (N, 2*Cout, H, W)."""
    N, Cin, H, W = x_nchw.shape
    KH, WCin, WCout = prep['T'].shape
    Cout = WCout // W
    C2 = 2 * Cout
    J = 2 * WCout
    NH = N * H
    inv_cnt = 1.0 / float(N * H * W)
    f32 = jnp.float32
    mm_dtype = prep['T'].dtype

    # Lane-packed activations: rows = (n, h), lanes = (w, ci).
    x2 = jnp.transpose(x_nchw, (0, 2, 3, 1)).reshape(NH, WCin).astype(mm_dtype)

    def kernel(x_ref, t_ref, sel_ref, rw_ref, gw_ref, csum_ref, ctile_ref,
               vecs_ref, o_ref):
        x = x_ref[...]                                              # (NH, W*Cin) bf16

        # -- one stacked 0/1 selection matmul:
        #    rows [ky*NH:(ky+1)*NH] = x shifted by (ky - ph) rows (zero at image edges)
        #    rows [KH*NH:]          = per-image row sums (global avg-pool numerator)
        xs = jnp.dot(sel_ref[...], x, preferred_element_type=f32).astype(mm_dtype)

        # -- 21x21 conv: KH compact width-Toeplitz MXU matmuls into a lane-dense
        #    (NH, W*Cout) f32 accumulator (conv bias dropped: no-op under BN1).
        acc = jnp.zeros((NH, WCout), f32)
        for ky in range(KH):
            acc = acc + jnp.dot(xs[ky * NH:(ky + 1) * NH, :], t_ref[ky],
                                preferred_element_type=f32)

        # -- BN1 (training-mode batch stats) + ReLU; batched 2-row stat / tile matmuls --
        s = jnp.concatenate([jnp.sum(acc, axis=0, keepdims=True),
                             jnp.sum(acc * acc, axis=0, keepdims=True)], axis=0)
        st = jnp.dot(s, csum_ref[:WCout, :Cout], preferred_element_type=f32) * inv_cnt
        mean1 = st[0:1, :]
        var1 = st[1:2, :] - mean1 * mean1      # E[x^2]-E[x]^2, f32, zero-mean-ish conv output
        scale1 = vecs_ref[0:1, :Cout] * jax.lax.rsqrt(var1 + eps)
        shift1 = vecs_ref[1:2, :Cout] - mean1 * scale1
        tl1 = jnp.dot(jnp.concatenate([scale1, shift1], axis=0),
                      ctile_ref[:Cout, :WCout], preferred_element_type=f32)   # (2, W*Cout)
        lk = jnp.maximum(acc * tl1[0:1, :] + tl1[1:2, :], 0.0)

        # -- global branch: (pool @ x) @ (g_w/(H*W)), broadcast over (h, w) by construction
        #    (g_b dropped: exact no-op under BN2) --
        glob = jnp.dot(xs[KH * NH:, :], gw_ref[...], preferred_element_type=f32)

        # block layout: lanes [0:W*Cout) = lk channels, [W*Cout:2*W*Cout) = global channels
        full = jnp.concatenate([lk, glob], axis=1)                  # (NH, J)

        # -- residual 1x1 conv as a block-diagonal matmul (lane-dense) --
        res = jnp.dot(x, rw_ref[...], preferred_element_type=f32) + vecs_ref[4:5, :]

        # -- BN2 (training-mode batch stats) + residual + ReLU --
        t = jnp.concatenate([jnp.sum(full, axis=0, keepdims=True),
                             jnp.sum(full * full, axis=0, keepdims=True)], axis=0)
        st2 = jnp.dot(t, csum_ref[...], preferred_element_type=f32) * inv_cnt  # (2, C2)
        mean2 = st2[0:1, :]
        var2 = st2[1:2, :] - mean2 * mean2
        scale2 = vecs_ref[2:3, :C2] * jax.lax.rsqrt(var2 + eps)
        shift2 = vecs_ref[3:4, :C2] - mean2 * scale2
        tl2 = jnp.dot(jnp.concatenate([scale2, shift2], axis=0), ctile_ref[...],
                      preferred_element_type=f32)                               # (2, J)
        o_ref[...] = jnp.maximum(full * tl2[0:1, :] + tl2[1:2, :] + res,
                                 0.0).astype(o_ref.dtype)

    operands = (x2, prep['T'], prep['sel'], prep['rw'], prep['gw'],
                prep['csum'], prep['ctile'], prep['vecs'])

    flops = (2 * prep['sel'].shape[0] * NH * WCin          # selection / pool matmul
             + 2 * KH * NH * WCin * WCout                  # Toeplitz conv matmuls
             + 2 * NH * WCin * J                           # residual matmul
             + 2 * NH * WCin * WCout                       # global matmul
             + 12 * NH * J)                                # BN / elementwise
    bytes_accessed = sum(int(op.size) * op.dtype.itemsize for op in operands) + NH * J * 4

    out2 = pl.pallas_call(
        kernel,
        out_shape=jax.ShapeDtypeStruct((NH, J), f32),
        grid=(1,),
        in_specs=[_full_spec(op.shape) for op in operands],
        out_specs=_full_spec((NH, J)),
        compiler_params=pltpu.CompilerParams(
            dimension_semantics=("arbitrary",),
            vmem_limit_bytes=32 * 1024 * 1024),
        cost_estimate=pl.CostEstimate(flops=int(flops), transcendentals=4 * Cout,
                                      bytes_accessed=int(bytes_accessed)),
    )(*operands)

    # (NH, 2*W*Cout) block-layout slab -> (N, 2*Cout, H, W) NCHW.
    return jnp.transpose(out2.reshape(N, H, 2, W, Cout),
                         (0, 2, 4, 1, 3)).reshape(N, 2 * Cout, H, W)


# ---------------------------------------------------------------------------------
# Deterministic parameter init (shapes follow the nn.Module __init__).
# ---------------------------------------------------------------------------------
def init_params(key, cin, cout, k):
    ks = jax.random.split(key, 10)
    s = 0.1
    return {
        'lk_w': s * jax.random.normal(ks[0], (k, k, cin, cout), jnp.float32),   # HWIO
        'lk_b': s * jax.random.normal(ks[1], (cout,), jnp.float32),
        'bn1_g': 1.0 + s * jax.random.normal(ks[2], (cout,), jnp.float32),
        'bn1_b': s * jax.random.normal(ks[3], (cout,), jnp.float32),
        'g_w': s * jax.random.normal(ks[4], (cin, cout), jnp.float32),
        'g_b': s * jax.random.normal(ks[5], (cout,), jnp.float32),
        'res_w': s * jax.random.normal(ks[6], (cin, 2 * cout), jnp.float32),
        'res_b': s * jax.random.normal(ks[7], (2 * cout,), jnp.float32),
        'bn2_g': 1.0 + s * jax.random.normal(ks[8], (2 * cout,), jnp.float32),
        'bn2_b': s * jax.random.normal(ks[9], (2 * cout,), jnp.float32),
    }


# ---------------------------------------------------------------------------------
# Pure-JAX f32 reference (same math, XLA ops) for a correctness spot check.
# ---------------------------------------------------------------------------------
def _bn_train(y, gamma, beta, eps=1e-5):
    mean = jnp.mean(y, axis=(0, 1, 2), keepdims=True)
    var = jnp.mean((y - mean) ** 2, axis=(0, 1, 2), keepdims=True)
    return (y - mean) * jax.lax.rsqrt(var + eps) * gamma + beta


def ref_forward(x_nchw, params):
    N, Cin, H, W = x_nchw.shape
    KH, KW, _, Cout = params['lk_w'].shape
    ph, pw = KH // 2, KW // 2
    x = jnp.transpose(x_nchw, (0, 2, 3, 1))                                      # NHWC
    res = jnp.einsum('nhwc,cd->nhwd', x, params['res_w']) + params['res_b']
    y = jax.lax.conv_general_dilated(
        x, params['lk_w'], (1, 1), [(ph, ph), (pw, pw)],
        dimension_numbers=('NHWC', 'HWIO', 'NHWC')) + params['lk_b']
    y = jnp.maximum(_bn_train(y, params['bn1_g'], params['bn1_b']), 0.0)
    g = jnp.mean(x, axis=(1, 2)) @ params['g_w'] + params['g_b']                 # (N, Cout)
    g = jnp.broadcast_to(g[:, None, None, :], (N, H, W, Cout))                   # bilinear of 1x1 == broadcast
    z = _bn_train(jnp.concatenate([y, g], axis=-1), params['bn2_g'], params['bn2_b'])
    out = jnp.maximum(z + res, 0.0)
    return jnp.transpose(out, (0, 3, 1, 2))


if __name__ == "__main__":
    key = jax.random.PRNGKey(0)
    kx, kp = jax.random.split(key)

    N, Cin, H, W = 2, 4, 16, 16
    Cout, K = 8, 21                                   # module defaults: kernel_size=21
    x = jax.random.normal(kx, (N, Cin, H, W), dtype=jnp.float32)   # NCHW like PyTorch
    params = init_params(kp, Cin, Cout, K)

    # One-time parameter packing (NOT in the per-call path).
    prep = prepare_params(params, N, Cin, H, W)

    fwd = jax.jit(context_aware_feature_aggregation)
    out = jax.block_until_ready(fwd(x, prep))
    assert out.shape == (N, 2 * Cout, H, W), out.shape

    ref = jax.block_until_ready(jax.jit(ref_forward)(x, params))
    err = float(jnp.max(jnp.abs(out - ref)))
    # bf16 MXU operands (per the perf review) bound the error at ~1e-2 vs the f32 reference;
    # BN stats / accumulation stay in f32.
    assert jnp.allclose(out, ref, rtol=2e-2, atol=2e-2), err

    print("KERNEL_OK")
</pallas_src>

<mosaic_0001>
module attributes {stable_mosaic.version = 11 : i64} {
  func.func @kernel(%arg0: i32, %arg1: memref<32x64xbf16, #tpu.memory_space<vmem>>, %arg2: memref<21x64x128xbf16, #tpu.memory_space<vmem>>, %arg3: memref<704x32xbf16, #tpu.memory_space<vmem>>, %arg4: memref<64x256xbf16, #tpu.memory_space<vmem>>, %arg5: memref<64x128xbf16, #tpu.memory_space<vmem>>, %arg6: memref<256x16xf32, #tpu.memory_space<vmem>>, %arg7: memref<16x256xf32, #tpu.memory_space<vmem>>, %arg8: memref<8x256xf32, #tpu.memory_space<vmem>>, %arg9: memref<32x256xf32, #tpu.memory_space<vmem>>) attributes {dimension_semantics = [#tpu.dimension_semantics<arbitrary>], iteration_bounds = array<i64: 1>, scalar_prefetch = 0 : i64, scratch_operands = 0 : i64, tpu.core_type = #tpu.core_type<tc>, window_params = [{pipeline_mode = #tpu.pipeline_mode<synchronous>, transform_indices = @transform_0, window_bounds = array<i64: 32, 64>}, {pipeline_mode = #tpu.pipeline_mode<synchronous>, transform_indices = @transform_1, window_bounds = array<i64: 21, 64, 128>}, {pipeline_mode = #tpu.pipeline_mode<synchronous>, transform_indices = @transform_2, window_bounds = array<i64: 704, 32>}, {pipeline_mode = #tpu.pipeline_mode<synchronous>, transform_indices = @transform_3, window_bounds = array<i64: 64, 256>}, {pipeline_mode = #tpu.pipeline_mode<synchronous>, transform_indices = @transform_4, window_bounds = array<i64: 64, 128>}, {pipeline_mode = #tpu.pipeline_mode<synchronous>, transform_indices = @transform_5, window_bounds = array<i64: 256, 16>}, {pipeline_mode = #tpu.pipeline_mode<synchronous>, transform_indices = @transform_6, window_bounds = array<i64: 16, 256>}, {pipeline_mode = #tpu.pipeline_mode<synchronous>, transform_indices = @transform_7, window_bounds = array<i64: 8, 256>}, {pipeline_mode = #tpu.pipeline_mode<synchronous>, transform_indices = @transform_8, window_bounds = array<i64: 32, 256>}]} {
    %c0 = arith.constant 0 : index
    %c0_0 = arith.constant 0 : index
    %0 = vector.load %arg1[%c0, %c0_0] : memref<32x64xbf16, #tpu.memory_space<vmem>>, vector<32x64xbf16>
    %c0_1 = arith.constant 0 : index
    %c0_2 = arith.constant 0 : index
    %1 = vector.load %arg3[%c0_1, %c0_2] : memref<704x32xbf16, #tpu.memory_space<vmem>>, vector<704x32xbf16>
    %cst = arith.constant dense<0.000000e+00> : vector<704x64xf32>
    %2 = tpu.matmul %1, %0, %cst {dimension_numbers = #tpu.dot_dimension_numbers<[1], [0], [0], [1], [0, 0, 1, 1], [], []>} : vector<704x32xbf16>, vector<32x64xbf16>, vector<704x64xf32> -> vector<704x64xf32>
    %3 = arith.truncf %2 : vector<704x64xf32> to vector<704x64xbf16>
    %cst_3 = arith.constant 0.000000e+00 : f32
    %4 = vector.broadcast %cst_3 : f32 to vector<32x128xf32>
    %5 = vector.extract_strided_slice %3 {offsets = [0, 0], sizes = [32, 64], strides = [1, 1]} : vector<704x64xbf16> to vector<32x64xbf16>
    %c0_4 = arith.constant 0 : index
    %c0_5 = arith.constant 0 : index
    %c0_6 = arith.constant 0 : index
    %6 = vector.load %arg2[%c0_4, %c0_5, %c0_6] : memref<21x64x128xbf16, #tpu.memory_space<vmem>>, vector<1x64x128xbf16>
    %7 = vector.shape_cast %6 : vector<1x64x128xbf16> to vector<64x128xbf16>
    %cst_7 = arith.constant dense<0.000000e+00> : vector<32x128xf32>
    %8 = tpu.matmul %5, %7, %cst_7 {dimension_numbers = #tpu.dot_dimension_numbers<[1], [0], [0], [1], [0, 0, 1, 1], [], []>} : vector<32x64xbf16>, vector<64x128xbf16>, vector<32x128xf32> -> vector<32x128xf32>
    %9 = arith.addf %4, %8 : vector<32x128xf32>
    %10 = vector.extract_strided_slice %3 {offsets = [32, 0], sizes = [32, 64], strides = [1, 1]} : vector<704x64xbf16> to vector<32x64xbf16>
    %c1 = arith.constant 1 : index
    %c0_8 = arith.constant 0 : index
    %c0_9 = arith.constant 0 : index
    %11 = vector.load %arg2[%c1, %c0_8, %c0_9] : memref<21x64x128xbf16, #tpu.memory_space<vmem>>, vector<1x64x128xbf16>
    %12 = vector.shape_cast %11 : vector<1x64x128xbf16> to vector<64x128xbf16>
    %cst_10 = arith.constant dense<0.000000e+00> : vector<32x128xf32>
    %13 = tpu.matmul %10, %12, %cst_10 {dimension_numbers = #tpu.dot_dimension_numbers<[1], [0], [0], [1], [0, 0, 1, 1], [], []>} : vector<32x64xbf16>, vector<64x128xbf16>, vector<32x128xf32> -> vector<32x128xf32>
    %14 = arith.addf %9, %13 : vector<32x128xf32>
    %15 = vector.extract_strided_slice %3 {offsets = [64, 0], sizes = [32, 64], strides = [1, 1]} : vector<704x64xbf16> to vector<32x64xbf16>
    %c2 = arith.constant 2 : index
    %c0_11 = arith.constant 0 : index
    %c0_12 = arith.constant 0 : index
    %16 = vector.load %arg2[%c2, %c0_11, %c0_12] : memref<21x64x128xbf16, #tpu.memory_space<vmem>>, vector<1x64x128xbf16>
    %17 = vector.shape_cast %16 : vector<1x64x128xbf16> to vector<64x128xbf16>
    %cst_13 = arith.constant dense<0.000000e+00> : vector<32x128xf32>
    %18 = tpu.matmul %15, %17, %cst_13 {dimension_numbers = #tpu.dot_dimension_numbers<[1], [0], [0], [1], [0, 0, 1, 1], [], []>} : vector<32x64xbf16>, vector<64x128xbf16>, vector<32x128xf32> -> vector<32x128xf32>
    %19 = arith.addf %14, %18 : vector<32x128xf32>
    %20 = vector.extract_strided_slice %3 {offsets = [96, 0], sizes = [32, 64], strides = [1, 1]} : vector<704x64xbf16> to vector<32x64xbf16>
    %c3 = arith.constant 3 : index
    %c0_14 = arith.constant 0 : index
    %c0_15 = arith.constant 0 : index
    %21 = vector.load %arg2[%c3, %c0_14, %c0_15] : memref<21x64x128xbf16, #tpu.memory_space<vmem>>, vector<1x64x128xbf16>
    %22 = vector.shape_cast %21 : vector<1x64x128xbf16> to vector<64x128xbf16>
    %cst_16 = arith.constant dense<0.000000e+00> : vector<32x128xf32>
    %23 = tpu.matmul %20, %22, %cst_16 {dimension_numbers = #tpu.dot_dimension_numbers<[1], [0], [0], [1], [0, 0, 1, 1], [], []>} : vector<32x64xbf16>, vector<64x128xbf16>, vector<32x128xf32> -> vector<32x128xf32>
    %24 = arith.addf %19, %23 : vector<32x128xf32>
    %25 = vector.extract_strided_slice %3 {offsets = [128, 0], sizes = [32, 64], strides = [1, 1]} : vector<704x64xbf16> to vector<32x64xbf16>
    %c4 = arith.constant 4 : index
    %c0_17 = arith.constant 0 : index
    %c0_18 = arith.constant 0 : index
    %26 = vector.load %arg2[%c4, %c0_17, %c0_18] : memref<21x64x128xbf16, #tpu.memory_space<vmem>>, vector<1x64x128xbf16>
    %27 = vector.shape_cast %26 : vector<1x64x128xbf16> to vector<64x128xbf16>
    %cst_19 = arith.constant dense<0.000000e+00> : vector<32x128xf32>
    %28 = tpu.matmul %25, %27, %cst_19 {dimension_numbers = #tpu.dot_dimension_numbers<[1], [0], [0], [1], [0, 0, 1, 1], [], []>} : vector<32x64xbf16>, vector<64x128xbf16>, vector<32x128xf32> -> vector<32x128xf32>
    %29 = arith.addf %24, %28 : vector<32x128xf32>
    %30 = vector.extract_strided_slice %3 {offsets = [160, 0], sizes = [32, 64], strides = [1, 1]} : vector<704x64xbf16> to vector<32x64xbf16>
    %c5 = arith.constant 5 : index
    %c0_20 = arith.constant 0 : index
    %c0_21 = arith.constant 0 : index
    %31 = vector.load %arg2[%c5, %c0_20, %c0_21] : memref<21x64x128xbf16, #tpu.memory_space<vmem>>, vector<1x64x128xbf16>
    %32 = vector.shape_cast %31 : vector<1x64x128xbf16> to vector<64x128xbf16>
    %cst_22 = arith.constant dense<0.000000e+00> : vector<32x128xf32>
    %33 = tpu.matmul %30, %32, %cst_22 {dimension_numbers = #tpu.dot_dimension_numbers<[1], [0], [0], [1], [0, 0, 1, 1], [], []>} : vector<32x64xbf16>, vector<64x128xbf16>, vector<32x128xf32> -> vector<32x128xf32>
    %34 = arith.addf %29, %33 : vector<32x128xf32>
    %35 = vector.extract_strided_slice %3 {offsets = [192, 0], sizes = [32, 64], strides = [1, 1]} : vector<704x64xbf16> to vector<32x64xbf16>
    %c6 = arith.constant 6 : index
    %c0_23 = arith.constant 0 : index
    %c0_24 = arith.constant 0 : index
    %36 = vector.load %arg2[%c6, %c0_23, %c0_24] : memref<21x64x128xbf16, #tpu.memory_space<vmem>>, vector<1x64x128xbf16>
    %37 = vector.shape_cast %36 : vector<1x64x128xbf16> to vector<64x128xbf16>
    %cst_25 = arith.constant dense<0.000000e+00> : vector<32x128xf32>
    %38 = tpu.matmul %35, %37, %cst_25 {dimension_numbers = #tpu.dot_dimension_numbers<[1], [0], [0], [1], [0, 0, 1, 1], [], []>} : vector<32x64xbf16>, vector<64x128xbf16>, vector<32x128xf32> -> vector<32x128xf32>
    %39 = arith.addf %34, %38 : vector<32x128xf32>
    %40 = vector.extract_strided_slice %3 {offsets = [224, 0], sizes = [32, 64], strides = [1, 1]} : vector<704x64xbf16> to vector<32x64xbf16>
    %c7 = arith.constant 7 : index
    %c0_26 = arith.constant 0 : index
    %c0_27 = arith.constant 0 : index
    %41 = vector.load %arg2[%c7, %c0_26, %c0_27] : memref<21x64x128xbf16, #tpu.memory_space<vmem>>, vector<1x64x128xbf16>
    %42 = vector.shape_cast %41 : vector<1x64x128xbf16> to vector<64x128xbf16>
    %cst_28 = arith.constant dense<0.000000e+00> : vector<32x128xf32>
    %43 = tpu.matmul %40, %42, %cst_28 {dimension_numbers = #tpu.dot_dimension_numbers<[1], [0], [0], [1], [0, 0, 1, 1], [], []>} : vector<32x64xbf16>, vector<64x128xbf16>, vector<32x128xf32> -> vector<32x128xf32>
    %44 = arith.addf %39, %43 : vector<32x128xf32>
    %45 = vector.extract_strided_slice %3 {offsets = [256, 0], sizes = [32, 64], strides = [1, 1]} : vector<704x64xbf16> to vector<32x64xbf16>
    %c8 = arith.constant 8 : index
    %c0_29 = arith.constant 0 : index
    %c0_30 = arith.constant 0 : index
    %46 = vector.load %arg2[%c8, %c0_29, %c0_30] : memref<21x64x128xbf16, #tpu.memory_space<vmem>>, vector<1x64x128xbf16>
    %47 = vector.shape_cast %46 : vector<1x64x128xbf16> to vector<64x128xbf16>
    %cst_31 = arith.constant dense<0.000000e+00> : vector<32x128xf32>
    %48 = tpu.matmul %45, %47, %cst_31 {dimension_numbers = #tpu.dot_dimension_numbers<[1], [0], [0], [1], [0, 0, 1, 1], [], []>} : vector<32x64xbf16>, vector<64x128xbf16>, vector<32x128xf32> -> vector<32x128xf32>
    %49 = arith.addf %44, %48 : vector<32x128xf32>
    %50 = vector.extract_strided_slice %3 {offsets = [288, 0], sizes = [32, 64], strides = [1, 1]} : vector<704x64xbf16> to vector<32x64xbf16>
    %c9 = arith.constant 9 : index
    %c0_32 = arith.constant 0 : index
    %c0_33 = arith.constant 0 : index
    %51 = vector.load %arg2[%c9, %c0_32, %c0_33] : memref<21x64x128xbf16, #tpu.memory_space<vmem>>, vector<1x64x128xbf16>
    %52 = vector.shape_cast %51 : vector<1x64x128xbf16> to vector<64x128xbf16>
    %cst_34 = arith.constant dense<0.000000e+00> : vector<32x128xf32>
    %53 = tpu.matmul %50, %52, %cst_34 {dimension_numbers = #tpu.dot_dimension_numbers<[1], [0], [0], [1], [0, 0, 1, 1], [], []>} : vector<32x64xbf16>, vector<64x128xbf16>, vector<32x128xf32> -> vector<32x128xf32>
    %54 = arith.addf %49, %53 : vector<32x128xf32>
    %55 = vector.extract_strided_slice %3 {offsets = [320, 0], sizes = [32, 64], strides = [1, 1]} : vector<704x64xbf16> to vector<32x64xbf16>
    %c10 = arith.constant 10 : index
    %c0_35 = arith.constant 0 : index
    %c0_36 = arith.constant 0 : index
    %56 = vector.load %arg2[%c10, %c0_35, %c0_36] : memref<21x64x128xbf16, #tpu.memory_space<vmem>>, vector<1x64x128xbf16>
    %57 = vector.shape_cast %56 : vector<1x64x128xbf16> to vector<64x128xbf16>
    %cst_37 = arith.constant dense<0.000000e+00> : vector<32x128xf32>
    %58 = tpu.matmul %55, %57, %cst_37 {dimension_numbers = #tpu.dot_dimension_numbers<[1], [0], [0], [1], [0, 0, 1, 1], [], []>} : vector<32x64xbf16>, vector<64x128xbf16>, vector<32x128xf32> -> vector<32x128xf32>
    %59 = arith.addf %54, %58 : vector<32x128xf32>
    %60 = vector.extract_strided_slice %3 {offsets = [352, 0], sizes = [32, 64], strides = [1, 1]} : vector<704x64xbf16> to vector<32x64xbf16>
    %c11 = arith.constant 11 : index
    %c0_38 = arith.constant 0 : index
    %c0_39 = arith.constant 0 : index
    %61 = vector.load %arg2[%c11, %c0_38, %c0_39] : memref<21x64x128xbf16, #tpu.memory_space<vmem>>, vector<1x64x128xbf16>
    %62 = vector.shape_cast %61 : vector<1x64x128xbf16> to vector<64x128xbf16>
    %cst_40 = arith.constant dense<0.000000e+00> : vector<32x128xf32>
    %63 = tpu.matmul %60, %62, %cst_40 {dimension_numbers = #tpu.dot_dimension_numbers<[1], [0], [0], [1], [0, 0, 1, 1], [], []>} : vector<32x64xbf16>, vector<64x128xbf16>, vector<32x128xf32> -> vector<32x128xf32>
    %64 = arith.addf %59, %63 : vector<32x128xf32>
    %65 = vector.extract_strided_slice %3 {offsets = [384, 0], sizes = [32, 64], strides = [1, 1]} : vector<704x64xbf16> to vector<32x64xbf16>
    %c12 = arith.constant 12 : index
    %c0_41 = arith.constant 0 : index
    %c0_42 = arith.constant 0 : index
    %66 = vector.load %arg2[%c12, %c0_41, %c0_42] : memref<21x64x128xbf16, #tpu.memory_space<vmem>>, vector<1x64x128xbf16>
    %67 = vector.shape_cast %66 : vector<1x64x128xbf16> to vector<64x128xbf16>
    %cst_43 = arith.constant dense<0.000000e+00> : vector<32x128xf32>
    %68 = tpu.matmul %65, %67, %cst_43 {dimension_numbers = #tpu.dot_dimension_numbers<[1], [0], [0], [1], [0, 0, 1, 1], [], []>} : vector<32x64xbf16>, vector<64x128xbf16>, vector<32x128xf32> -> vector<32x128xf32>
    %69 = arith.addf %64, %68 : vector<32x128xf32>
    %70 = vector.extract_strided_slice %3 {offsets = [416, 0], sizes = [32, 64], strides = [1, 1]} : vector<704x64xbf16> to vector<32x64xbf16>
    %c13 = arith.constant 13 : index
    %c0_44 = arith.constant 0 : index
    %c0_45 = arith.constant 0 : index
    %71 = vector.load %arg2[%c13, %c0_44, %c0_45] : memref<21x64x128xbf16, #tpu.memory_space<vmem>>, vector<1x64x128xbf16>
    %72 = vector.shape_cast %71 : vector<1x64x128xbf16> to vector<64x128xbf16>
    %cst_46 = arith.constant dense<0.000000e+00> : vector<32x128xf32>
    %73 = tpu.matmul %70, %72, %cst_46 {dimension_numbers = #tpu.dot_dimension_numbers<[1], [0], [0], [1], [0, 0, 1, 1], [], []>} : vector<32x64xbf16>, vector<64x128xbf16>, vector<32x128xf32> -> vector<32x128xf32>
    %74 = arith.addf %69, %73 : vector<32x128xf32>
    %75 = vector.extract_strided_slice %3 {offsets = [448, 0], sizes = [32, 64], strides = [1, 1]} : vector<704x64xbf16> to vector<32x64xbf16>
    %c14 = arith.constant 14 : index
    %c0_47 = arith.constant 0 : index
    %c0_48 = arith.constant 0 : index
    %76 = vector.load %arg2[%c14, %c0_47, %c0_48] : memref<21x64x128xbf16, #tpu.memory_space<vmem>>, vector<1x64x128xbf16>
    %77 = vector.shape_cast %76 : vector<1x64x128xbf16> to vector<64x128xbf16>
    %cst_49 = arith.constant dense<0.000000e+00> : vector<32x128xf32>
    %78 = tpu.matmul %75, %77, %cst_49 {dimension_numbers = #tpu.dot_dimension_numbers<[1], [0], [0], [1], [0, 0, 1, 1], [], []>} : vector<32x64xbf16>, vector<64x128xbf16>, vector<32x128xf32> -> vector<32x128xf32>
    %79 = arith.addf %74, %78 : vector<32x128xf32>
    %80 = vector.extract_strided_slice %3 {offsets = [480, 0], sizes = [32, 64], strides = [1, 1]} : vector<704x64xbf16> to vector<32x64xbf16>
    %c15 = arith.constant 15 : index
    %c0_50 = arith.constant 0 : index
    %c0_51 = arith.constant 0 : index
    %81 = vector.load %arg2[%c15, %c0_50, %c0_51] : memref<21x64x128xbf16, #tpu.memory_space<vmem>>, vector<1x64x128xbf16>
    %82 = vector.shape_cast %81 : vector<1x64x128xbf16> to vector<64x128xbf16>
    %cst_52 = arith.constant dense<0.000000e+00> : vector<32x128xf32>
    %83 = tpu.matmul %80, %82, %cst_52 {dimension_numbers = #tpu.dot_dimension_numbers<[1], [0], [0], [1], [0, 0, 1, 1], [], []>} : vector<32x64xbf16>, vector<64x128xbf16>, vector<32x128xf32> -> vector<32x128xf32>
    %84 = arith.addf %79, %83 : vector<32x128xf32>
    %85 = vector.extract_strided_slice %3 {offsets = [512, 0], sizes = [32, 64], strides = [1, 1]} : vector<704x64xbf16> to vector<32x64xbf16>
    %c16 = arith.constant 16 : index
    %c0_53 = arith.constant 0 : index
    %c0_54 = arith.constant 0 : index
    %86 = vector.load %arg2[%c16, %c0_53, %c0_54] : memref<21x64x128xbf16, #tpu.memory_space<vmem>>, vector<1x64x128xbf16>
    %87 = vector.shape_cast %86 : vector<1x64x128xbf16> to vector<64x128xbf16>
    %cst_55 = arith.constant dense<0.000000e+00> : vector<32x128xf32>
    %88 = tpu.matmul %85, %87, %cst_55 {dimension_numbers = #tpu.dot_dimension_numbers<[1], [0], [0], [1], [0, 0, 1, 1], [], []>} : vector<32x64xbf16>, vector<64x128xbf16>, vector<32x128xf32> -> vector<32x128xf32>
    %89 = arith.addf %84, %88 : vector<32x128xf32>
    %90 = vector.extract_strided_slice %3 {offsets = [544, 0], sizes = [32, 64], strides = [1, 1]} : vector<704x64xbf16> to vector<32x64xbf16>
    %c17 = arith.constant 17 : index
    %c0_56 = arith.constant 0 : index
    %c0_57 = arith.constant 0 : index
    %91 = vector.load %arg2[%c17, %c0_56, %c0_57] : memref<21x64x128xbf16, #tpu.memory_space<vmem>>, vector<1x64x128xbf16>
    %92 = vector.shape_cast %91 : vector<1x64x128xbf16> to vector<64x128xbf16>
    %cst_58 = arith.constant dense<0.000000e+00> : vector<32x128xf32>
    %93 = tpu.matmul %90, %92, %cst_58 {dimension_numbers = #tpu.dot_dimension_numbers<[1], [0], [0], [1], [0, 0, 1, 1], [], []>} : vector<32x64xbf16>, vector<64x128xbf16>, vector<32x128xf32> -> vector<32x128xf32>
    %94 = arith.addf %89, %93 : vector<32x128xf32>
    %95 = vector.extract_strided_slice %3 {offsets = [576, 0], sizes = [32, 64], strides = [1, 1]} : vector<704x64xbf16> to vector<32x64xbf16>
    %c18 = arith.constant 18 : index
    %c0_59 = arith.constant 0 : index
    %c0_60 = arith.constant 0 : index
    %96 = vector.load %arg2[%c18, %c0_59, %c0_60] : memref<21x64x128xbf16, #tpu.memory_space<vmem>>, vector<1x64x128xbf16>
    %97 = vector.shape_cast %96 : vector<1x64x128xbf16> to vector<64x128xbf16>
    %cst_61 = arith.constant dense<0.000000e+00> : vector<32x128xf32>
    %98 = tpu.matmul %95, %97, %cst_61 {dimension_numbers = #tpu.dot_dimension_numbers<[1], [0], [0], [1], [0, 0, 1, 1], [], []>} : vector<32x64xbf16>, vector<64x128xbf16>, vector<32x128xf32> -> vector<32x128xf32>
    %99 = arith.addf %94, %98 : vector<32x128xf32>
    %100 = vector.extract_strided_slice %3 {offsets = [608, 0], sizes = [32, 64], strides = [1, 1]} : vector<704x64xbf16> to vector<32x64xbf16>
    %c19 = arith.constant 19 : index
    %c0_62 = arith.constant 0 : index
    %c0_63 = arith.constant 0 : index
    %101 = vector.load %arg2[%c19, %c0_62, %c0_63] : memref<21x64x128xbf16, #tpu.memory_space<vmem>>, vector<1x64x128xbf16>
    %102 = vector.shape_cast %101 : vector<1x64x128xbf16> to vector<64x128xbf16>
    %cst_64 = arith.constant dense<0.000000e+00> : vector<32x128xf32>
    %103 = tpu.matmul %100, %102, %cst_64 {dimension_numbers = #tpu.dot_dimension_numbers<[1], [0], [0], [1], [0, 0, 1, 1], [], []>} : vector<32x64xbf16>, vector<64x128xbf16>, vector<32x128xf32> -> vector<32x128xf32>
    %104 = arith.addf %99, %103 : vector<32x128xf32>
    %105 = vector.extract_strided_slice %3 {offsets = [640, 0], sizes = [32, 64], strides = [1, 1]} : vector<704x64xbf16> to vector<32x64xbf16>
    %c20 = arith.constant 20 : index
    %c0_65 = arith.constant 0 : index
    %c0_66 = arith.constant 0 : index
    %106 = vector.load %arg2[%c20, %c0_65, %c0_66] : memref<21x64x128xbf16, #tpu.memory_space<vmem>>, vector<1x64x128xbf16>
    %107 = vector.shape_cast %106 : vector<1x64x128xbf16> to vector<64x128xbf16>
    %cst_67 = arith.constant dense<0.000000e+00> : vector<32x128xf32>
    %108 = tpu.matmul %105, %107, %cst_67 {dimension_numbers = #tpu.dot_dimension_numbers<[1], [0], [0], [1], [0, 0, 1, 1], [], []>} : vector<32x64xbf16>, vector<64x128xbf16>, vector<32x128xf32> -> vector<32x128xf32>
    %109 = arith.addf %104, %108 : vector<32x128xf32>
    %cst_68 = arith.constant dense<0.000000e+00> : vector<128xf32>
    %110 = vector.multi_reduction <add>, %109, %cst_68 [0] : vector<32x128xf32> to vector<128xf32>
    %111 = vector.shape_cast %110 : vector<128xf32> to vector<1x128xf32>
    %112 = arith.mulf %109, %109 : vector<32x128xf32>
    %cst_69 = arith.constant dense<0.000000e+00> : vector<128xf32>
    %113 = vector.multi_reduction <add>, %112, %cst_69 [0] : vector<32x128xf32> to vector<128xf32>
    %114 = vector.shape_cast %113 : vector<128xf32> to vector<1x128xf32>
    %115 = tpu.concatenate %111, %114 in 0 : vector<1x128xf32>, vector<1x128xf32> -> vector<2x128xf32>
    %c0_70 = arith.constant 0 : index
    %c0_71 = arith.constant 0 : index
    %116 = vector.load %arg6[%c0_70, %c0_71] : memref<256x16xf32, #tpu.memory_space<vmem>>, vector<128x8xf32>
    %cst_72 = arith.constant dense<0.000000e+00> : vector<2x8xf32>
    %117 = tpu.matmul %115, %116, %cst_72 {dimension_numbers = #tpu.dot_dimension_numbers<[1], [0], [0], [1], [0, 0, 1, 1], [], []>} : vector<2x128xf32>, vector<128x8xf32>, vector<2x8xf32> -> vector<2x8xf32>
    %cst_73 = arith.constant 0.001953125 : f32
    %118 = vector.broadcast %cst_73 : f32 to vector<2x8xf32>
    %119 = arith.mulf %117, %118 : vector<2x8xf32>
    %120 = vector.extract_strided_slice %119 {offsets = [0, 0], sizes = [1, 8], strides = [1, 1]} : vector<2x8xf32> to vector<1x8xf32>
    %121 = vector.extract_strided_slice %119 {offsets = [1, 0], sizes = [1, 8], strides = [1, 1]} : vector<2x8xf32> to vector<1x8xf32>
    %122 = arith.mulf %120, %120 : vector<1x8xf32>
    %123 = arith.subf %121, %122 : vector<1x8xf32>
    %c0_74 = arith.constant 0 : index
    %c0_75 = arith.constant 0 : index
    %124 = vector.load %arg8[%c0_74, %c0_75] : memref<8x256xf32, #tpu.memory_space<vmem>>, vector<1x8xf32>
    %cst_76 = arith.constant 9.99999974E-6 : f32
    %125 = vector.broadcast %cst_76 : f32 to vector<1x8xf32>
    %126 = arith.addf %123, %125 : vector<1x8xf32>
    %127 = math.rsqrt %126 : vector<1x8xf32>
    %128 = arith.mulf %124, %127 : vector<1x8xf32>
    %c1_77 = arith.constant 1 : index
    %c0_78 = arith.constant 0 : index
    %129 = vector.load %arg8[%c1_77, %c0_78] : memref<8x256xf32, #tpu.memory_space<vmem>>, vector<1x8xf32>
    %130 = arith.mulf %120, %128 : vector<1x8xf32>
    %131 = arith.subf %129, %130 : vector<1x8xf32>
    %132 = tpu.concatenate %128, %131 in 0 : vector<1x8xf32>, vector<1x8xf32> -> vector<2x8xf32>
    %c0_79 = arith.constant 0 : index
    %c0_80 = arith.constant 0 : index
    %133 = vector.load %arg7[%c0_79, %c0_80] : memref<16x256xf32, #tpu.memory_space<vmem>>, vector<8x128xf32>
    %cst_81 = arith.constant dense<0.000000e+00> : vector<2x128xf32>
    %134 = tpu.matmul %132, %133, %cst_81 {dimension_numbers = #tpu.dot_dimension_numbers<[1], [0], [0], [1], [0, 0, 1, 1], [], []>} : vector<2x8xf32>, vector<8x128xf32>, vector<2x128xf32> -> vector<2x128xf32>
    %135 = vector.extract_strided_slice %134 {offsets = [0, 0], sizes = [1, 128], strides = [1, 1]} : vector<2x128xf32> to vector<1x128xf32>
    %136 = vector.broadcast %135 : vector<1x128xf32> to vector<32x128xf32>
    %137 = arith.mulf %109, %136 : vector<32x128xf32>
    %138 = vector.extract_strided_slice %134 {offsets = [1, 0], sizes = [1, 128], strides = [1, 1]} : vector<2x128xf32> to vector<1x128xf32>
    %139 = vector.broadcast %138 : vector<1x128xf32> to vector<32x128xf32>
    %140 = arith.addf %137, %139 : vector<32x128xf32>
    %cst_82 = arith.constant 0.000000e+00 : f32
    %141 = vector.broadcast %cst_82 : f32 to vector<32x128xf32>
    %142 = arith.maximumf %140, %141 : vector<32x128xf32>
    %143 = vector.extract_strided_slice %3 {offsets = [672, 0], sizes = [32, 64], strides = [1, 1]} : vector<704x64xbf16> to vector<32x64xbf16>
    %c0_83 = arith.constant 0 : index
    %c0_84 = arith.constant 0 : index
    %144 = vector.load %arg5[%c0_83, %c0_84] : memref<64x128xbf16, #tpu.memory_space<vmem>>, vector<64x128xbf16>
    %cst_85 = arith.constant dense<0.000000e+00> : vector<32x128xf32>
    %145 = tpu.matmul %143, %144, %cst_85 {dimension_numbers = #tpu.dot_dimension_numbers<[1], [0], [0], [1], [0, 0, 1, 1], [], []>} : vector<32x64xbf16>, vector<64x128xbf16>, vector<32x128xf32> -> vector<32x128xf32>
    %146 = tpu.concatenate %142, %145 in 1 : vector<32x128xf32>, vector<32x128xf32> -> vector<32x256xf32>
    %c0_86 = arith.constant 0 : index
    %c0_87 = arith.constant 0 : index
    %147 = vector.load %arg4[%c0_86, %c0_87] : memref<64x256xbf16, #tpu.memory_space<vmem>>, vector<64x256xbf16>
    %cst_88 = arith.constant dense<0.000000e+00> : vector<32x256xf32>
    %148 = tpu.matmul %0, %147, %cst_88 {dimension_numbers = #tpu.dot_dimension_numbers<[1], [0], [0], [1], [0, 0, 1, 1], [], []>} : vector<32x64xbf16>, vector<64x256xbf16>, vector<32x256xf32> -> vector<32x256xf32>
    %c4_89 = arith.constant 4 : index
    %c0_90 = arith.constant 0 : index
    %149 = vector.load %arg8[%c4_89, %c0_90] : memref<8x256xf32, #tpu.memory_space<vmem>>, vector<1x256xf32>
    %150 = vector.broadcast %149 : vector<1x256xf32> to vector<32x256xf32>
    %151 = arith.addf %148, %150 : vector<32x256xf32>
    %cst_91 = arith.constant dense<0.000000e+00> : vector<256xf32>
    %152 = vector.multi_reduction <add>, %146, %cst_91 [0] : vector<32x256xf32> to vector<256xf32>
    %153 = vector.shape_cast %152 : vector<256xf32> to vector<1x256xf32>
    %154 = arith.mulf %146, %146 : vector<32x256xf32>
    %cst_92 = arith.constant dense<0.000000e+00> : vector<256xf32>
    %155 = vector.multi_reduction <add>, %154, %cst_92 [0] : vector<32x256xf32> to vector<256xf32>
    %156 = vector.shape_cast %155 : vector<256xf32> to vector<1x256xf32>
    %157 = tpu.concatenate %153, %156 in 0 : vector<1x256xf32>, vector<1x256xf32> -> vector<2x256xf32>
    %c0_93 = arith.constant 0 : index
    %c0_94 = arith.constant 0 : index
    %158 = vector.load %arg6[%c0_93, %c0_94] : memref<256x16xf32, #tpu.memory_space<vmem>>, vector<256x16xf32>
    %cst_95 = arith.constant dense<0.000000e+00> : vector<2x16xf32>
    %159 = tpu.matmul %157, %158, %cst_95 {dimension_numbers = #tpu.dot_dimension_numbers<[1], [0], [0], [1], [0, 0, 1, 1], [], []>} : vector<2x256xf32>, vector<256x16xf32>, vector<2x16xf32> -> vector<2x16xf32>
    %cst_96 = arith.constant 0.001953125 : f32
    %160 = vector.broadcast %cst_96 : f32 to vector<2x16xf32>
    %161 = arith.mulf %159, %160 : vector<2x16xf32>
    %162 = vector.extract_strided_slice %161 {offsets = [0, 0], sizes = [1, 16], strides = [1, 1]} : vector<2x16xf32> to vector<1x16xf32>
    %163 = vector.extract_strided_slice %161 {offsets = [1, 0], sizes = [1, 16], strides = [1, 1]} : vector<2x16xf32> to vector<1x16xf32>
    %164 = arith.mulf %162, %162 : vector<1x16xf32>
    %165 = arith.subf %163, %164 : vector<1x16xf32>
    %c2_97 = arith.constant 2 : index
    %c0_98 = arith.constant 0 : index
    %166 = vector.load %arg8[%c2_97, %c0_98] : memref<8x256xf32, #tpu.memory_space<vmem>>, vector<1x16xf32>
    %cst_99 = arith.constant 9.99999974E-6 : f32
    %167 = vector.broadcast %cst_99 : f32 to vector<1x16xf32>
    %168 = arith.addf %165, %167 : vector<1x16xf32>
    %169 = math.rsqrt %168 : vector<1x16xf32>
    %170 = arith.mulf %166, %169 : vector<1x16xf32>
    %c3_100 = arith.constant 3 : index
    %c0_101 = arith.constant 0 : index
    %171 = vector.load %arg8[%c3_100, %c0_101] : memref<8x256xf32, #tpu.memory_space<vmem>>, vector<1x16xf32>
    %172 = arith.mulf %162, %170 : vector<1x16xf32>
    %173 = arith.subf %171, %172 : vector<1x16xf32>
    %174 = tpu.concatenate %170, %173 in 0 : vector<1x16xf32>, vector<1x16xf32> -> vector<2x16xf32>
    %c0_102 = arith.constant 0 : index
    %c0_103 = arith.constant 0 : index
    %175 = vector.load %arg7[%c0_102, %c0_103] : memref<16x256xf32, #tpu.memory_space<vmem>>, vector<16x256xf32>
    %cst_104 = arith.constant dense<0.000000e+00> : vector<2x256xf32>
    %176 = tpu.matmul %174, %175, %cst_104 {dimension_numbers = #tpu.dot_dimension_numbers<[1], [0], [0], [1], [0, 0, 1, 1], [], []>} : vector<2x16xf32>, vector<16x256xf32>, vector<2x256xf32> -> vector<2x256xf32>
    %177 = vector.extract_strided_slice %176 {offsets = [0, 0], sizes = [1, 256], strides = [1, 1]} : vector<2x256xf32> to vector<1x256xf32>
    %178 = vector.broadcast %177 : vector<1x256xf32> to vector<32x256xf32>
    %179 = arith.mulf %146, %178 : vector<32x256xf32>
    %180 = vector.extract_strided_slice %176 {offsets = [1, 0], sizes = [1, 256], strides = [1, 1]} : vector<2x256xf32> to vector<1x256xf32>
    %181 = vector.broadcast %180 : vector<1x256xf32> to vector<32x256xf32>
    %182 = arith.addf %179, %181 : vector<32x256xf32>
    %183 = arith.addf %182, %151 : vector<32x256xf32>
    %cst_105 = arith.constant 0.000000e+00 : f32
    %184 = vector.broadcast %cst_105 : f32 to vector<32x256xf32>
    %185 = arith.maximumf %183, %184 : vector<32x256xf32>
    %c0_106 = arith.constant 0 : index
    %c0_107 = arith.constant 0 : index
    %186 = vector.load %arg9[%c0_106, %c0_107] : memref<32x256xf32, #tpu.memory_space<vmem>>, vector<32x256xf32>
    tpu.vector_store %arg9[%c0_106, %c0_107], %185 {strides = array<i32>} : memref<32x256xf32, #tpu.memory_space<vmem>>, vector<32x256xf32>,
    return
  }
  func.func @transform_0(%arg0: i32) -> (i32, i32) {
    %c0_i32 = arith.constant 0 : i32
    %c0_i32_0 = arith.constant 0 : i32
    %c0_i32_1 = arith.constant 0 : i32
    return %c0_i32, %c0_i32_0 : i32, i32
  }
  func.func @transform_1(%arg0: i32) -> (i32, i32, i32) {
    %c0_i32 = arith.constant 0 : i32
    %c0_i32_0 = arith.constant 0 : i32
    %c0_i32_1 = arith.constant 0 : i32
    %c0_i32_2 = arith.constant 0 : i32
    return %c0_i32, %c0_i32_0, %c0_i32_1 : i32, i32, i32
  }
  func.func @transform_2(%arg0: i32) -> (i32, i32) {
    %c0_i32 = arith.constant 0 : i32
    %c0_i32_0 = arith.constant 0 : i32
    %c0_i32_1 = arith.constant 0 : i32
    return %c0_i32, %c0_i32_0 : i32, i32
  }
  func.func @transform_3(%arg0: i32) -> (i32, i32) {
    %c0_i32 = arith.constant 0 : i32
    %c0_i32_0 = arith.constant 0 : i32
    %c0_i32_1 = arith.constant 0 : i32
    return %c0_i32, %c0_i32_0 : i32, i32
  }
  func.func @transform_4(%arg0: i32) -> (i32, i32) {
    %c0_i32 = arith.constant 0 : i32
    %c0_i32_0 = arith.constant 0 : i32
    %c0_i32_1 = arith.constant 0 : i32
    return %c0_i32, %c0_i32_0 : i32, i32
  }
  func.func @transform_5(%arg0: i32) -> (i32, i32) {
    %c0_i32 = arith.constant 0 : i32
    %c0_i32_0 = arith.constant 0 : i32
    %c0_i32_1 = arith.constant 0 : i32
    return %c0_i32, %c0_i32_0 : i32, i32
  }
  func.func @transform_6(%arg0: i32) -> (i32, i32) {
    %c0_i32 = arith.constant 0 : i32
    %c0_i32_0 = arith.constant 0 : i32
    %c0_i32_1 = arith.constant 0 : i32
    return %c0_i32, %c0_i32_0 : i32, i32
  }
  func.func @transform_7(%arg0: i32) -> (i32, i32) {
    %c0_i32 = arith.constant 0 : i32
    %c0_i32_0 = arith.constant 0 : i32
    %c0_i32_1 = arith.constant 0 : i32
    return %c0_i32, %c0_i32_0 : i32, i32
  }
  func.func @transform_8(%arg0: i32) -> (i32, i32) {
    %c0_i32 = arith.constant 0 : i32
    %c0_i32_0 = arith.constant 0 : i32
    %c0_i32_1 = arith.constant 0 : i32
    return %c0_i32, %c0_i32_0 : i32, i32
  }
}

</mosaic_0001>

<bundles_post_ra>
// kernel: context_aware_feature_aggregation.1
= control target key start
LH: loop header
LB: loop body
LE: loop exit
PB: predicated region body
PF: predicated region fallthrough
CT: control target
= control target key end

     0   :  { %vm354_vm0 = vcmask 261120   ;;  %vm957_vm1 = vcmask 523264   ;;  %vm4899_vm2 = vmmov 0   ;;  %vm2862_vm3 = vcmask 1040384   ;;  %s6029_s0 = inlined_call_operand.vmem [shape: bf16[32,64], index: 0, kind: input, shape index: {}]   ;;  %s6030_s2 = inlined_call_operand.vmem [shape: bf16[704,32], index: 2, kind: input, shape index: {}]   ;;  %s6031_s1 = inlined_call_operand.vmem [shape: bf16[21,64,128], index: 1, kind: input, shape index: {}]   ;;  %s6032_s5 = inlined_call_operand.vmem [shape: f32[256,16], index: 5, kind: input, shape index: {}]   ;;  %s6033_s6 = inlined_call_operand.vmem [shape: f32[16,256], index: 6, kind: input, shape index: {}]   ;;  %s6034_s4 = inlined_call_operand.vmem [shape: bf16[64,128], index: 4, kind: input, shape index: {}]   ;;  %s6035_s3 = inlined_call_operand.vmem [shape: bf16[64,256], index: 3, kind: input, shape index: {}]   ;;  %s6036_s7 = inlined_call_operand.vmem [shape: f32[8,256], index: 7, kind: input, shape index: {}]   ;;  %s6037_s8 = inlined_call_operand.vmem [shape: f32[32,256], index: 8, kind: output, shape index: {}]  }
   0x1   :  { %v4746_v0 = vld [vmem:[%s6029_s0] sm:$0xff]   ;;  %v4747_v1 = vld [vmem:[%s6029_s0 + $0x8] sm:$0xff]   ;;  %v4750_v4 = vld [vmem:[%s6030_s2 + $0x10] sm:$0xff]   ;;  %vm2971_vm4 = vcmask 64512   ;;  %vm3444_vm5 = vcmask 130048  }
   0x2   :  { %4206 = vmatprep.subr.bf16.mxu0 %v4746_v0  ;;  %v4748_v2 = vld [vmem:[%s6030_s2] sm:$0xff]   ;;  %v4749_v3 = vld [vmem:[%s6030_s2 + $0x8] sm:$0xff]   ;;  %v4751_v5 = vld [vmem:[%s6030_s2 + $0x18] sm:$0xff]  }
   0x3   :  { %4207 = vmatpush3.bf16.msra.mxu0 %v4746_v0  ;;  %4210 = vmatprep.mubr.msk.bf16.mxu0 %vm354_vm0, %v4748_v2  ;;  %v4752_v6 = vld [vmem:[%s6030_s2 + $0x20] sm:$0xff]   ;;  %v4753_v7 = vld [vmem:[%s6030_s2 + $0x28] sm:$0xff]   ;;  %v4754_v8 = vld [vmem:[%s6030_s2 + $0x30] sm:$0xff]  }
   0x4   :  { %4208 = vmatprep.subr.bf16.mxu0 %v4747_v1  ;;  %v4755_v9 = vld [vmem:[%s6030_s2 + $0x38] sm:$0xff]   ;;  %v4756_v10 = vld [vmem:[%s6030_s2 + $0x40] sm:$0xff]   ;;  %v4757_v11 = vld [vmem:[%s6030_s2 + $0x48] sm:$0xff]  }
   0x5   :  { %v4758_v12 = vld [vmem:[%s6030_s2 + $0x50] sm:$0xff]   ;;  %v4789_v13 = vld [vmem:[%s6031_s1 + $0x20] sm:$0xff]   ;;  %v4759_v14 = vld [vmem:[%s6030_s2 + $0x58] sm:$0xff]  }
   0x6   :  { %v4760_v15 = vld [vmem:[%s6030_s2 + $0x60] sm:$0xff]   ;;  %v4761_v16 = vld [vmem:[%s6030_s2 + $0x68] sm:$0xff]   ;;  %v4762_v17 = vld [vmem:[%s6030_s2 + $0x70] sm:$0xff]  }
   0x7   :  { %4209 = vmatpush3.bf16.msra.mxu0 %v4747_v1  ;;  %v4763_v18 = vld [vmem:[%s6030_s2 + $0x78] sm:$0xff]   ;;  %v4764_v19 = vld [vmem:[%s6030_s2 + $0x80] sm:$0xff]   ;;  %v4765_v20 = vld [vmem:[%s6030_s2 + $0x88] sm:$0xff]  }
   0x8   :  { %4298 = vmatprep.subr.bf16.mxu0 %v4789_v13  ;;  %v4766_v21 = vld [vmem:[%s6030_s2 + $0x90] sm:$0xff]   ;;  %v4767_v22 = vld [vmem:[%s6030_s2 + $0x98] sm:$0xff]   ;;  %v4768_v23 = vld [vmem:[%s6030_s2 + $0xa0] sm:$0xff]  }
   0x9   :  { %v4769_v24 = vld [vmem:[%s6030_s2 + $0xa8] sm:$0xff]   ;;  %v4770_v25 = vld [vmem:[%s6030_s2 + $0xb0] sm:$0xff]   ;;  %v4771_v26 = vld [vmem:[%s6030_s2 + $0xb8] sm:$0xff]  }
   0xa   :  { %4211 = vmatmul.mubr.msk.bf16.vlgmr.msra.gmra.mrb[0].mxu0 %vm354_vm0, %v4749_v3  ;;  %v4772_v27 = vld [vmem:[%s6030_s2 + $0xc0] sm:$0xff]   ;;  %v4791_v28 = vld [vmem:[%s6031_s1 + $0x28] sm:$0xff]   ;;  %v4793_v29 = vld [vmem:[%s6031_s1 + $0x30] sm:$0xff]  }
   0xb   :  { %4214 = vmatprep.mubr.msk.bf16.mxu0 %vm354_vm0, %v4750_v4  ;;  %4299 = vmatpush3.bf16.msra.mxu0 %v4789_v13  ;;  %v4794_v30 = vld [vmem:[%s6031_s1 + $0x40] sm:$0xff]   ;;  %v4773_v31 = vld [vmem:[%s6030_s2 + $0xc8] sm:$0xff]   ;;  %v4774_v32 = vld [vmem:[%s6030_s2 + $0xd0] sm:$0xff]  }
   0xc   :  { %4300 = vmatprep.subr.bf16.mxu0 %v4791_v28  ;;  %4322 = vmatprep.subr.bf16.mxu1 %v4794_v30  ;;  %v4796_v33 = vld [vmem:[%s6031_s1 + $0x38] sm:$0xff]   ;;  %v4797_v34 = vld [vmem:[%s6031_s1 + $0x48] sm:$0xff]   ;;  %v4798_v35 = vld [vmem:[%s6031_s1] sm:$0xff]  }
   0xd   :  { %4323 = vmatpush3.bf16.msra.mxu1 %v4794_v30  ;;  %v4799_v36 = vld [vmem:[%s6031_s1 + $0x50] sm:$0xff]   ;;  %v4775_v37 = vld [vmem:[%s6030_s2 + $0xd8] sm:$0xff]   ;;  %v4776_v39 = vld [vmem:[%s6030_s2 + $0xe0] sm:$0xff]  }
   0xe   :  { %4324 = vmatprep.subr.bf16.mxu1 %v4797_v34  ;;  %v4801_v38 = vld [vmem:[%s6031_s1 + $0x58] sm:$0xff]   ;;  %v5098_v40 = vld [vmem:[%s6031_s1 + $0x60] sm:$0xff]   ;;  %v4777_v41 = vld [vmem:[%s6030_s2 + $0xe8] sm:$0xff]  }
   0xf   :  { %4301 = vmatpush3.bf16.msra.mxu0 %v4791_v28  ;;  %v4778_v42 = vld [vmem:[%s6030_s2 + $0xf0] sm:$0xff]   ;;  %v4779_v43 = vld [vmem:[%s6030_s2 + $0xf8] sm:$0xff]   ;;  %v4780_v44 = vld [vmem:[%s6030_s2 + $0x100] sm:$0xff]  }
  0x10   :  { %4302 = vmatprep.subr.bf16.mxu0 %v4793_v29  ;;  %v4781_v45 = vld [vmem:[%s6030_s2 + $0x108] sm:$0xff]   ;;  %v4782_v46 = vld [vmem:[%s6030_s2 + $0x110] sm:$0xff]   ;;  %v4783_v47 = vld [vmem:[%s6030_s2 + $0x118] sm:$0xff]  }
  0x11   :  { %4325 = vmatpush3.bf16.msra.mxu1 %v4797_v34  ;;  %v4784_v48 = vld [vmem:[%s6030_s2 + $0x120] sm:$0xff]   ;;  %v4785_v49 = vld [vmem:[%s6030_s2 + $0x128] sm:$0xff]   ;;  %v4786_v50 = vld [vmem:[%s6030_s2 + $0x130] sm:$0xff]  }
  0x12   :  { %4215 = vmatmul.mubr.msk.bf16.gmra.mrb[4].mxu0 %vm354_vm0, %v4751_v5  ;;  %4326 = vmatprep.subr.bf16.mxu1 %v4799_v36  ;;  %v4787_v51 = vld [vmem:[%s6030_s2 + $0x138] sm:$0xff]   ;;  %v4788_v52 = vld [vmem:[%s6030_s2 + $0x140] sm:$0xff]   ;;  %v4790_v53 = vld [vmem:[%s6030_s2 + $0x148] sm:$0xff]  }
  0x13   :  { %4218 = vmatprep.mubr.msk.bf16.mxu0 %vm354_vm0, %v4752_v6  ;;  %4303 = vmatpush3.bf16.msra.mxu0 %v4793_v29  ;;  %v4792_v54 = vld [vmem:[%s6030_s2 + $0x150] sm:$0xff]   ;;  %v4795_v55 = vld [vmem:[%s6030_s2 + $0x158] sm:$0xff]   ;;  %v4800_v4 = vld [vmem:[%s6031_s1 + $0x8] sm:$0xff]  }
  0x14   :  { %4304 = vmatprep.subr.bf16.mxu0 %v4796_v33  ;;  %v4805_v13 = vld [vmem:[%s6031_s1 + $0x68] sm:$0xff]  }
  0x15   :  { %4327 = vmatpush3.bf16.msra.mxu1 %v4799_v36  ;;  %v4809_v29 = vld [vmem:[%s6031_s1 + $0x88] sm:$0xff]  }
  0x16   :  { %4328 = vmatprep.subr.bf16.mxu1 %v4801_v38 }
  0x17   :  { %4305 = vmatpush3.bf16.msra.mxu0 %v4796_v33 }
  0x18   :  { %4310 = vmatprep.subr.bf16.mxu0 %v4798_v35 }
  0x19   :  { %4329 = vmatpush3.bf16.msra.mxu1 %v4801_v38 }
  0x1a   :  { %4219 = vmatmul.mubr.msk.bf16.gmra.mrb[8].mxu0 %vm354_vm0, %v4753_v7  ;;  %4334 = vmatprep.subr.bf16.mxu1 %v5098_v40  ;;  %v4802_v7 = vld [vmem:[%s6031_s1 + $0x10] sm:$0xff]  }
  0x1b   :  { %4222 = vmatprep.mubr.msk.bf16.mxu0 %vm354_vm0, %v4754_v8 }
  0x22   :  { %4223 = vmatmul.mubr.msk.bf16.gmra.mrb[12].mxu0 %vm354_vm0, %v4755_v9 }
  0x23   :  { %4226 = vmatprep.mubr.msk.bf16.mxu0 %vm354_vm0, %v4756_v10 }
  0x2a   :  { %4227 = vmatmul.mubr.msk.bf16.gmra.mrb[16].mxu0 %vm354_vm0, %v4757_v11 }
  0x2b   :  { %4230 = vmatprep.mubr.msk.bf16.mxu0 %vm354_vm0, %v4758_v12  ;;  %v4804_v12 = vld [vmem:[%s6031_s1 + $0x18] sm:$0xff]  }
  0x32   :  { %4231 = vmatmul.mubr.msk.bf16.gmra.mrb[20].mxu0 %vm354_vm0, %v4759_v14 }
  0x33   :  { %4234 = vmatprep.mubr.msk.bf16.mxu0 %vm354_vm0, %v4760_v15 }
  0x3a   :  { %4235 = vmatmul.mubr.msk.bf16.gmra.mrb[24].mxu0 %vm354_vm0, %v4761_v16  ;;  %v4806_v16 = vld [vmem:[%s6031_s1 + $0x70] sm:$0xff]  }
  0x3b   :  { %4238 = vmatprep.mubr.msk.bf16.mxu0 %vm354_vm0, %v4762_v17 }
  0x42   :  { %4239 = vmatmul.mubr.msk.bf16.gmra.mrb[28].mxu0 %vm354_vm0, %v4763_v18 }
  0x43   :  { %4242 = vmatprep.mubr.msk.bf16.mxu0 %vm354_vm0, %v4764_v19 }
  0x4a   :  { %4243 = vmatmul.mubr.msk.bf16.gmra.mrb[32].mxu0 %vm354_vm0, %v4765_v20 }
  0x4b   :  { %4246 = vmatprep.mubr.msk.bf16.mxu0 %vm354_vm0, %v4766_v21  ;;  %v4807_v21 = vld [vmem:[%s6031_s1 + $0x78] sm:$0xff]  }
  0x52   :  { %4247 = vmatmul.mubr.msk.bf16.gmra.mrb[36].mxu0 %vm354_vm0, %v4767_v22 }
  0x53   :  { %4250 = vmatprep.mubr.msk.bf16.mxu0 %vm354_vm0, %v4768_v23  ;;  %v4808_v23 = vld [vmem:[%s6031_s1 + $0x80] sm:$0xff]  }
  0x5a   :  { %4251 = vmatmul.mubr.msk.bf16.gmra.mrb[40].mxu0 %vm354_vm0, %v4769_v24 }
  0x5b   :  { %4254 = vmatprep.mubr.msk.bf16.mxu0 %vm354_vm0, %v4770_v25 }
  0x62   :  { %4255 = vmatmul.mubr.msk.bf16.gmra.mrb[44].mxu0 %vm354_vm0, %v4771_v26 }
  0x63   :  { %4258 = vmatprep.mubr.msk.bf16.mxu0 %vm354_vm0, %v4772_v27 }
  0x6a   :  { %4259 = vmatmul.mubr.msk.bf16.gmra.mrb[48].mxu0 %vm354_vm0, %v4773_v31  ;;  %v4810_v31 = vld [vmem:[%s6031_s1 + $0x90] sm:$0xff]  }
  0x6b   :  { %4262 = vmatprep.mubr.msk.bf16.mxu0 %vm354_vm0, %v4774_v32 }
  0x72   :  { %4263 = vmatmul.mubr.msk.bf16.gmra.mrb[52].mxu0 %vm354_vm0, %v4775_v37  ;;  %v4811_v37 = vld [vmem:[%s6031_s1 + $0x98] sm:$0xff]  }
  0x73   :  { %4266 = vmatprep.mubr.msk.bf16.mxu0 %vm354_vm0, %v4776_v39  ;;  %v4812_v39 = vld [vmem:[%s6031_s1 + $0xa0] sm:$0xff]  }
  0x7a   :  { %4267 = vmatmul.mubr.msk.bf16.gmra.mrb[56].mxu0 %vm354_vm0, %v4777_v41 }
  0x7b   :  { %4270 = vmatprep.mubr.msk.bf16.mxu0 %vm354_vm0, %v4778_v42 }
  0x82   :  { %4271 = vmatmul.mubr.msk.bf16.gmra.mrb[60].mxu0 %vm354_vm0, %v4779_v43 }
  0x83   :  { %4274 = vmatprep.mubr.msk.bf16.mxu0 %vm354_vm0, %v4780_v44 }
  0x8a   :  { %4275 = vmatmul.mubr.msk.bf16.gmra.mrb[64].mxu0 %vm354_vm0, %v4781_v45  ;;  %v4813_v45 = vld [vmem:[%s6031_s1 + $0xa8] sm:$0xff]  }
  0x8b   :  { %4278 = vmatprep.mubr.msk.bf16.mxu0 %vm354_vm0, %v4782_v46 }
  0x92   :  { %4279 = vmatmul.mubr.msk.bf16.gmra.mrb[68].mxu0 %vm354_vm0, %v4783_v47  ;;  %v4814_v47 = vld [vmem:[%s6031_s1 + $0xb0] sm:$0xff]  }
  0x93   :  { %4282 = vmatprep.mubr.msk.bf16.mxu0 %vm354_vm0, %v4784_v48 }
  0x9a   :  { %4283 = vmatmul.mubr.msk.bf16.gmra.mrb[72].mxu0 %vm354_vm0, %v4785_v49 }
  0x9b   :  { %4286 = vmatprep.mubr.msk.bf16.mxu0 %vm354_vm0, %v4786_v50 }
  0xa2   :  { %4287 = vmatmul.mubr.msk.bf16.gmra.mrb[76].mxu0 %vm354_vm0, %v4787_v51 }
  0xa3   :  { %4290 = vmatprep.mubr.msk.bf16.mxu0 %vm354_vm0, %v4788_v52 }
  0xaa   :  { %4291 = vmatmul.mubr.msk.bf16.gmra.mrb[80].mxu0 %vm354_vm0, %v4790_v53  ;;  %v4815_v53 = vld [vmem:[%s6031_s1 + $0xb8] sm:$0xff]  }
  0xab   :  { %4294 = vmatprep.mubr.msk.bf16.mxu0 %vm354_vm0, %v4792_v54 }
  0xb2   :  { %4295 = vmatmul.mubr.msk.bf16.gmra.mrb[84].mxu0 %vm354_vm0, %v4795_v55  ;;  %v4816_v55 = vld [vmem:[%s6031_s1 + $0xc0] sm:$0xff]  }
  0xdd   :  { %v4212_v56 = vpop.f32.mrb[0].mxu0 }
  0xde   :  { %v521_v57 = vpop.f32.mrb[1].mxu0 }
  0xdf   :  { %v4213_v58 = vpop.f32.mrb[2].mxu0 }
  0xe0   :  { %v873_v59 = vpack.c.bf16 %v4213_v58, %v4212_v56  ;;  %v524_v60 = vpop.f32.mrb[3].mxu0 }
  0xe1   :  { %v872_v61 = vpack.c.bf16 %v524_v60, %v521_v57 }
  0xe5   :  { %v4216_v62 = vpop.f32.mrb[4].mxu0 }
  0xe6   :  { %v537_v63 = vpop.f32.mrb[5].mxu0 }
  0xe7   :  { %v4217_v0 = vpop.f32.mrb[6].mxu0 }
  0xe8   :  { %v875_v1 = vpack.c.bf16 %v4217_v0, %v4216_v62  ;;  %v540_v2 = vpop.f32.mrb[7].mxu0 }
  0xe9   :  { %v874_v3 = vpack.c.bf16 %v540_v2, %v537_v63  ;;  %v4818_v63 = vld [vmem:[%s6031_s1 + $0xd0] sm:$0xff]  }
  0xeb   :  { %4306 = vmatprep.mubr.msk.bf16.mxu0 %vm957_vm1, %v874_v3 }
  0xec   :  { %4307 = vmatmul.mubr.msk.bf16.vlgmr.msra.gmra.mrb[88].mxu0 %vm957_vm1, %v875_v1 }
  0xed   :  { %4311 = vmatpush3.bf16.msra.mxu0 %v4798_v35  ;;  %v4220_v5 = vpop.f32.mrb[8].mxu0  ;;  %4318 = vmatprep.mubr.msk.bf16.mxu0 %vm957_vm1, %v872_v61  ;;  %v4817_v61 = vld [vmem:[%s6031_s1 + $0xc8] sm:$0xff]  }
  0xee   :  { %v553_v6 = vpop.f32.mrb[9].mxu0  ;;  %4312 = vmatprep.subr.bf16.mxu0 %v4800_v4 }
  0xef   :  { %v4221_v8 = vpop.f32.mrb[10].mxu0 }
  0xf0   :  { %v877_v9 = vpack.c.bf16 %v4221_v8, %v4220_v5  ;;  %v556_v10 = vpop.f32.mrb[11].mxu0  ;;  %v4819_v5 = vld [vmem:[%s6031_s1 + $0xd8] sm:$0xff]  }
  0xf1   :  { %v876_v11 = vpack.c.bf16 %v556_v10, %v553_v6  ;;  %4313 = vmatpush3.bf16.msra.mxu0 %v4800_v4 }
  0xf2   :  { %4314 = vmatprep.subr.bf16.mxu0 %v4802_v7 }
  0xf3   :  { %4330 = vmatprep.mubr.msk.bf16.mxu1 %vm957_vm1, %v876_v11 }
  0xf4   :  { %4331 = vmatmul.mubr.msk.bf16.vlgmr.msra.gmra.mrb[0].mxu1 %vm957_vm1, %v877_v9 }
  0xf5   :  { %4315 = vmatpush3.bf16.msra.mxu0 %v4802_v7  ;;  %4335 = vmatpush3.bf16.msra.mxu1 %v5098_v40  ;;  %v4224_v14 = vpop.f32.mrb[12].mxu0  ;;  %v4820_v7 = vld [vmem:[%s6031_s1 + $0xe0] sm:$0xff]  }
  0xf6   :  { %4316 = vmatprep.subr.bf16.mxu0 %v4804_v12  ;;  %4336 = vmatprep.subr.bf16.mxu1 %v4805_v13  ;;  %v569_v15 = vpop.f32.mrb[13].mxu0 }
  0xf7   :  { %v4225_v17 = vpop.f32.mrb[14].mxu0 }
  0xf8   :  { %v879_v18 = vpack.c.bf16 %v4225_v17, %v4224_v14  ;;  %v572_v19 = vpop.f32.mrb[15].mxu0 }
  0xf9   :  { %4317 = vmatpush3.bf16.msra.mxu0 %v4804_v12  ;;  %4337 = vmatpush3.bf16.msra.mxu1 %v4805_v13  ;;  %v878_v20 = vpack.c.bf16 %v572_v19, %v569_v15  ;;  %v4821_v13 = vld [vmem:[%s6031_s1 + $0xe8] sm:$0xff]   ;;  %v4822_v15 = vld [vmem:[%s6031_s1 + $0xf0] sm:$0xff]  }
  0xfa   :  { %4338 = vmatprep.subr.bf16.mxu1 %v4806_v16 }
  0xfb   :  { %4342 = vmatprep.mubr.msk.bf16.mxu1 %vm957_vm1, %v878_v20 }
  0xfc   :  { %4319 = vmatmul.mubr.msk.bf16.vlgmr.msra.gmra.mrb[88].mxu0 %vm957_vm1, %v873_v59 }
  0xfd   :  { %4339 = vmatpush3.bf16.msra.mxu1 %v4806_v16  ;;  %v4228_v22 = vpop.f32.mrb[16].mxu0 }
  0xfe   :  { %4340 = vmatprep.subr.bf16.mxu1 %v4807_v21  ;;  %v585_v24 = vpop.f32.mrb[17].mxu0 }
  0xff   :  { %v4229_v25 = vpop.f32.mrb[18].mxu0 }
 0x100   :  { %v881_v26 = vpack.c.bf16 %v4229_v25, %v4228_v22  ;;  %v588_v27 = vpop.f32.mrb[19].mxu0 }
 0x101   :  { %4341 = vmatpush3.bf16.msra.mxu1 %v4807_v21  ;;  %v880_v28 = vpack.c.bf16 %v588_v27, %v585_v24  ;;  %v4823_v21 = vld [vmem:[%s6031_s1 + $0xf8] sm:$0xff]  }
 0x102   :  { %4346 = vmatprep.subr.bf16.mxu1 %v4808_v23 }
 0x104   :  { %4343 = vmatmul.mubr.msk.bf16.vlgmr.msra.gmra.mrb[0].mxu1 %vm957_vm1, %v879_v18 }
 0x105   :  { %4347 = vmatpush3.bf16.msra.mxu1 %v4808_v23  ;;  %4354 = vmatprep.mubr.msk.bf16.mxu1 %vm957_vm1, %v880_v28  ;;  %v4232_v30 = vpop.f32.mrb[20].mxu0  ;;  %v4824_v23 = vld [vmem:[%s6031_s1 + $0x100] sm:$0xff]  }
 0x106   :  { %4348 = vmatprep.subr.bf16.mxu1 %v4809_v29  ;;  %v601_v32 = vpop.f32.mrb[21].mxu0 }
 0x107   :  { %v4233_v33 = vpop.f32.mrb[22].mxu0 }
 0x108   :  { %v883_v34 = vpack.c.bf16 %v4233_v33, %v4232_v30  ;;  %v604_v35 = vpop.f32.mrb[23].mxu0 }
 0x109   :  { %4349 = vmatpush3.bf16.msra.mxu1 %v4809_v29  ;;  %v882_v36 = vpack.c.bf16 %v604_v35, %v601_v32  ;;  %v4825_v29 = vld [vmem:[%s6031_s1 + $0x108] sm:$0xff]  }
 0x10a   :  { %4350 = vmatprep.subr.bf16.mxu1 %v4810_v31 }
 0x10d   :  { %4351 = vmatpush3.bf16.msra.mxu1 %v4810_v31  ;;  %v5202_v38 = vpop.f32.mrb[24].mxu0  ;;  %v4826_v31 = vld [vmem:[%s6031_s1 + $0x110] sm:$0xff]  }
 0x10e   :  { %4352 = vmatprep.subr.bf16.mxu1 %v4811_v37  ;;  %v617_v40 = vpop.f32.mrb[25].mxu0 }
 0x10f   :  { %v4237_v41 = vpop.f32.mrb[26].mxu0 }
 0x110   :  { %v885_v42 = vpack.c.bf16 %v4237_v41, %v5202_v38  ;;  %v620_v43 = vpop.f32.mrb[27].mxu0 }
 0x111   :  { %4353 = vmatpush3.bf16.msra.mxu1 %v4811_v37  ;;  %v884_v44 = vpack.c.bf16 %v620_v43, %v617_v40  ;;  %v4827_v37 = vld [vmem:[%s6031_s1 + $0x118] sm:$0xff]  }
 0x112   :  { %4358 = vmatprep.subr.bf16.mxu1 %v4812_v39 }
 0x114   :  { %4355 = vmatmul.mubr.msk.bf16.vlgmr.msra.gmra.mrb[0].mxu1 %vm957_vm1, %v881_v26 }
 0x115   :  { %4359 = vmatpush3.bf16.msra.mxu1 %v4812_v39  ;;  %4366 = vmatprep.mubr.msk.bf16.mxu1 %vm957_vm1, %v882_v36  ;;  %v5213_v46 = vpop.f32.mrb[28].mxu0  ;;  %v4828_v39 = vld [vmem:[%s6031_s1 + $0x120] sm:$0xff]  }
 0x116   :  { %4360 = vmatprep.subr.bf16.mxu1 %v4813_v45  ;;  %v633_v48 = vpop.f32.mrb[29].mxu0 }
 0x117   :  { %v5218_v49 = vpop.f32.mrb[30].mxu0 }
 0x118   :  { %v887_v50 = vpack.c.bf16 %v5218_v49, %v5213_v46  ;;  %v636_v51 = vpop.f32.mrb[31].mxu0 }
 0x119   :  { %4361 = vmatpush3.bf16.msra.mxu1 %v4813_v45  ;;  %v886_v52 = vpack.c.bf16 %v636_v51, %v633_v48  ;;  %v4829_v45 = vld [vmem:[%s6031_s1 + $0x128] sm:$0xff]  }
 0x11a   :  { %4362 = vmatprep.subr.bf16.mxu1 %v4814_v47 }
 0x11d   :  { %4363 = vmatpush3.bf16.msra.mxu1 %v4814_v47  ;;  %v5225_v54 = vpop.f32.mrb[32].mxu0  ;;  %v4830_v47 = vld [vmem:[%s6031_s1 + $0x130] sm:$0xff]  }
 0x11e   :  { %4364 = vmatprep.subr.bf16.mxu1 %v4815_v53  ;;  %v5230_v56 = vpop.f32.mrb[33].mxu0 }
 0x11f   :  { %v5232_v57 = vpop.f32.mrb[34].mxu0 }
 0x120   :  { %v889_v58 = vpack.c.bf16 %v5232_v57, %v5225_v54  ;;  %v652_v59 = vpop.f32.mrb[35].mxu0 }
 0x121   :  { %4365 = vmatpush3.bf16.msra.mxu1 %v4815_v53  ;;  %v888_v60 = vpack.c.bf16 %v652_v59, %v5230_v56  ;;  %v4831_v53 = vld [vmem:[%s6031_s1 + $0x138] sm:$0xff]  }
 0x122   :  { %4370 = vmatprep.subr.bf16.mxu1 %v4816_v55 }
 0x124   :  { %4367 = vmatmul.mubr.msk.bf16.vlgmr.msra.gmra.mrb[0].mxu1 %vm957_vm1, %v883_v34 }
 0x125   :  { %4371 = vmatpush3.bf16.msra.mxu1 %v4816_v55  ;;  %4378 = vmatprep.mubr.msk.bf16.mxu1 %vm957_vm1, %v884_v44  ;;  %v5242_v62 = vpop.f32.mrb[36].mxu0  ;;  %v4832_v55 = vld [vmem:[%s6031_s1 + $0x140] sm:$0xff]  }
 0x126   :  { %4372 = vmatprep.subr.bf16.mxu1 %v4817_v61  ;;  %v5247_v0 = vpop.f32.mrb[37].mxu0 }
 0x127   :  { %v5249_v1 = vpop.f32.mrb[38].mxu0 }
 0x128   :  { %v891_v2 = vpack.c.bf16 %v5249_v1, %v5242_v62  ;;  %v5253_v3 = vpop.f32.mrb[39].mxu0 }
 0x129   :  { %4373 = vmatpush3.bf16.msra.mxu1 %v4817_v61  ;;  %v890_v4 = vpack.c.bf16 %v5253_v3, %v5247_v0  ;;  %v4833_v61 = vld [vmem:[%s6031_s1 + $0x148] sm:$0xff]   ;;  %v4834_v0 = vld [vmem:[%s6031_s1 + $0x150] sm:$0xff]  }
 0x12a   :  { %4374 = vmatprep.subr.bf16.mxu1 %v4818_v63 }
 0x12d   :  { %4375 = vmatpush3.bf16.msra.mxu1 %v4818_v63  ;;  %v5260_v6 = vpop.f32.mrb[40].mxu0 }
 0x12e   :  { %4376 = vmatprep.subr.bf16.mxu1 %v4819_v5  ;;  %v5265_v8 = vpop.f32.mrb[41].mxu0 }
 0x12f   :  { %v5267_v9 = vpop.f32.mrb[42].mxu0 }
 0x130   :  { %v893_v10 = vpack.c.bf16 %v5267_v9, %v5260_v6  ;;  %v5271_v11 = vpop.f32.mrb[43].mxu0 }
 0x131   :  { %4377 = vmatpush3.bf16.msra.mxu1 %v4819_v5  ;;  %v892_v12 = vpack.c.bf16 %v5271_v11, %v5265_v8  ;;  %v4835_v5 = vld [vmem:[%s6031_s1 + $0x158] sm:$0xff]   ;;  %v4836_v8 = vld [vmem:[%s6031_s1 + $0x160] sm:$0xff]  }
 0x132   :  { %4382 = vmatprep.subr.bf16.mxu1 %v4820_v7 }
 0x134   :  { %4379 = vmatmul.mubr.msk.bf16.vlgmr.msra.gmra.mrb[0].mxu1 %vm957_vm1, %v885_v42 }
 0x135   :  { %4383 = vmatpush3.bf16.msra.mxu1 %v4820_v7  ;;  %4390 = vmatprep.mubr.msk.bf16.mxu1 %vm957_vm1, %v886_v52  ;;  %v5280_v14 = vpop.f32.mrb[44].mxu0 }
 0x136   :  { %4384 = vmatprep.subr.bf16.mxu1 %v4821_v13  ;;  %v5285_v16 = vpop.f32.mrb[45].mxu0 }
 0x137   :  { %v5287_v17 = vpop.f32.mrb[46].mxu0 }
 0x138   :  { %v895_v18 = vpack.c.bf16 %v5287_v17, %v5280_v14  ;;  %v5291_v19 = vpop.f32.mrb[47].mxu0 }
 0x139   :  { %4385 = vmatpush3.bf16.msra.mxu1 %v4821_v13  ;;  %v894_v20 = vpack.c.bf16 %v5291_v19, %v5285_v16  ;;  %v4839_v16 = vld [vmem:[%s6031_s1 + $0x178] sm:$0xff]  }
 0x13a   :  { %4386 = vmatprep.subr.bf16.mxu1 %v4822_v15 }
 0x13d   :  { %4387 = vmatpush3.bf16.msra.mxu1 %v4822_v15  ;;  %v5298_v22 = vpop.f32.mrb[48].mxu0 }
 0x13e   :  { %4388 = vmatprep.subr.bf16.mxu1 %v4823_v21  ;;  %v5303_v24 = vpop.f32.mrb[49].mxu0 }
 0x13f   :  { %v5305_v25 = vpop.f32.mrb[50].mxu0 }
 0x140   :  { %v897_v26 = vpack.c.bf16 %v5305_v25, %v5298_v22  ;;  %v5309_v27 = vpop.f32.mrb[51].mxu0  ;;  %v4846_v22 = vld [vmem:[%s6031_s1 + $0x1b0] sm:$0xff]   ;;  %v4898_v25 = vmov 0.0|0.0  }
 0x141   :  { %4389 = vmatpush3.bf16.msra.mxu1 %v4823_v21  ;;  %v896_v28 = vpack.c.bf16 %v5309_v27, %v5303_v24  ;;  %v4843_v24 = vld [vmem:[%s6031_s1 + $0x198] sm:$0xff]   ;;  %v4844_v27 = vld [vmem:[%s6031_s1 + $0x1a0] sm:$0xff]   ;;  %4602 = vmatprep.subr.bf16.mxu0 %v4898_v25 }
 0x142   :  { %4394 = vmatprep.subr.bf16.mxu1 %v4824_v23 }
 0x144   :  { %4391 = vmatmul.mubr.msk.bf16.vlgmr.msra.gmra.mrb[0].mxu1 %vm957_vm1, %v887_v50 }
 0x145   :  { %4395 = vmatpush3.bf16.msra.mxu1 %v4824_v23  ;;  %4402 = vmatprep.mubr.msk.bf16.mxu1 %vm957_vm1, %v888_v60  ;;  %v5321_v30 = vpop.f32.mrb[52].mxu0  ;;  %v4837_v23 = vld [vmem:[%s6031_s1 + $0x168] sm:$0xff]  }
 0x146   :  { %4396 = vmatprep.subr.bf16.mxu1 %v4825_v29  ;;  %v5326_v32 = vpop.f32.mrb[53].mxu0 }
 0x147   :  { %v5328_v33 = vpop.f32.mrb[54].mxu0 }
 0x148   :  { %v899_v34 = vpack.c.bf16 %v5328_v33, %v5321_v30  ;;  %v5332_v35 = vpop.f32.mrb[55].mxu0  ;;  %v4852_v30 = vld [vmem:[%s6031_s1 + $0x1e0] sm:$0xff]   ;;  %v4853_v33 = vld [vmem:[%s6031_s1 + $0x1e8] sm:$0xff]  }
 0x149   :  { %4397 = vmatpush3.bf16.msra.mxu1 %v4825_v29  ;;  %v898_v36 = vpack.c.bf16 %v5332_v35, %v5326_v32  ;;  %v4847_v32 = vld [vmem:[%s6031_s1 + $0x1b8] sm:$0xff]   ;;  %v4848_v35 = vld [vmem:[%s6031_s1 + $0x1c0] sm:$0xff]  }
 0x14a   :  { %4398 = vmatprep.subr.bf16.mxu1 %v4826_v31 }
 0x14d   :  { %4399 = vmatpush3.bf16.msra.mxu1 %v4826_v31  ;;  %v5339_v38 = vpop.f32.mrb[56].mxu0  ;;  %v4838_v31 = vld [vmem:[%s6031_s1 + $0x170] sm:$0xff]  }
 0x14e   :  { %4400 = vmatprep.subr.bf16.mxu1 %v4827_v37  ;;  %v5344_v40 = vpop.f32.mrb[57].mxu0 }
 0x14f   :  { %v5346_v41 = vpop.f32.mrb[58].mxu0 }
 0x150   :  { %v901_v42 = vpack.c.bf16 %v5346_v41, %v5339_v38  ;;  %v5350_v43 = vpop.f32.mrb[59].mxu0  ;;  %v4856_v38 = vld [vmem:[%s6031_s1 + $0x200] sm:$0xff]   ;;  %v4857_v41 = vld [vmem:[%s6031_s1 + $0x208] sm:$0xff]  }
 0x151   :  { %4401 = vmatpush3.bf16.msra.mxu1 %v4827_v37  ;;  %v900_v44 = vpack.c.bf16 %v5350_v43, %v5344_v40  ;;  %v4855_v40 = vld [vmem:[%s6031_s1 + $0x1f8] sm:$0xff]  }
 0x152   :  { %4406 = vmatprep.subr.bf16.mxu1 %v4828_v39  ;;  %v4859_v43 = vld [vmem:[%s6031_s1 + $0x218] sm:$0xff]  }
 0x154   :  { %4403 = vmatmul.mubr.msk.bf16.vlgmr.msra.gmra.mrb[0].mxu1 %vm957_vm1, %v889_v58 }
 0x155   :  { %4407 = vmatpush3.bf16.msra.mxu1 %v4828_v39  ;;  %4414 = vmatprep.mubr.msk.bf16.mxu1 %vm957_vm1, %v890_v4  ;;  %v5365_v46 = vpop.f32.mrb[60].mxu0 }
 0x156   :  { %4408 = vmatprep.subr.bf16.mxu1 %v4829_v45  ;;  %v5370_v48 = vpop.f32.mrb[61].mxu0 }
 0x157   :  { %v5372_v49 = vpop.f32.mrb[62].mxu0 }
 0x158   :  { %v903_v50 = vpack.c.bf16 %v5372_v49, %v5365_v46  ;;  %v5376_v51 = vpop.f32.mrb[63].mxu0 }
 0x159   :  { %4409 = vmatpush3.bf16.msra.mxu1 %v4829_v45  ;;  %v902_v52 = vpack.c.bf16 %v5376_v51, %v5370_v48  ;;  %v4861_v51 = vld [vmem:[%s6031_s1 + $0x228] sm:$0xff]  }
 0x15a   :  { %4410 = vmatprep.subr.bf16.mxu1 %v4830_v47 }
 0x15d   :  { %4411 = vmatpush3.bf16.msra.mxu1 %v4830_v47  ;;  %v5383_v54 = vpop.f32.mrb[64].mxu0 }
 0x15e   :  { %4412 = vmatprep.subr.bf16.mxu1 %v4831_v53  ;;  %v5388_v56 = vpop.f32.mrb[65].mxu0 }
 0x15f   :  { %v5390_v57 = vpop.f32.mrb[66].mxu0 }
 0x160   :  { %v905_v58 = vpack.c.bf16 %v5390_v57, %v5383_v54  ;;  %v5394_v59 = vpop.f32.mrb[67].mxu0  ;;  %v4864_v54 = vld [vmem:[%s6031_s1 + $0x240] sm:$0xff]   ;;  %v4865_v57 = vld [vmem:[%s6031_s1 + $0x248] sm:$0xff]  }
 0x161   :  { %4413 = vmatpush3.bf16.msra.mxu1 %v4831_v53  ;;  %v904_v60 = vpack.c.bf16 %v5394_v59, %v5388_v56  ;;  %v4863_v56 = vld [vmem:[%s6031_s1 + $0x238] sm:$0xff]  }
 0x162   :  { %4418 = vmatprep.subr.bf16.mxu1 %v4832_v55  ;;  %v4867_v59 = vld [vmem:[%s6031_s1 + $0x258] sm:$0xff]  }
 0x164   :  { %4415 = vmatmul.mubr.msk.bf16.vlgmr.msra.gmra.mrb[0].mxu1 %vm957_vm1, %v891_v2 }
 0x165   :  { %4419 = vmatpush3.bf16.msra.mxu1 %v4832_v55  ;;  %4426 = vmatprep.mubr.msk.bf16.mxu1 %vm957_vm1, %v892_v12  ;;  %v5409_v63 = vpop.f32.mrb[68].mxu0 }
 0x166   :  { %4420 = vmatprep.subr.bf16.mxu1 %v4833_v61  ;;  %v5414_v3 = vpop.f32.mrb[69].mxu0 }
 0x167   :  { %v5416_v4 = vpop.f32.mrb[70].mxu0 }
 0x168   :  { %v907_v62 = vpack.c.bf16 %v5416_v4, %v5409_v63  ;;  %v5420_v1 = vpop.f32.mrb[71].mxu0  ;;  %v4869_v63 = vld [vmem:[%s6031_s1 + $0x268] sm:$0xff]   ;;  %v4871_v4 = vld [vmem:[%s6031_s1 + $0x278] sm:$0xff]  }
 0x169   :  { %4421 = vmatpush3.bf16.msra.mxu1 %v4833_v61  ;;  %v906_v2 = vpack.c.bf16 %v5420_v1, %v5414_v3  ;;  %v4870_v3 = vld [vmem:[%s6031_s1 + $0x270] sm:$0xff]   ;;  %v4873_v1 = vld [vmem:[%s6031_s1 + $0x288] sm:$0xff]  }
 0x16a   :  { %4422 = vmatprep.subr.bf16.mxu1 %v4834_v0 }
 0x16d   :  { %4423 = vmatpush3.bf16.msra.mxu1 %v4834_v0  ;;  %v5427_v7 = vpop.f32.mrb[72].mxu0  ;;  %v4841_v0 = vld [vmem:[%s6031_s1 + $0x188] sm:$0xff]  }
 0x16e   :  { %4424 = vmatprep.subr.bf16.mxu1 %v4835_v5  ;;  %v5432_v11 = vpop.f32.mrb[73].mxu0 }
 0x16f   :  { %v5434_v12 = vpop.f32.mrb[74].mxu0 }
 0x170   :  { %v909_v13 = vpack.c.bf16 %v5434_v12, %v5427_v7  ;;  %v5438_v15 = vpop.f32.mrb[75].mxu0  ;;  %v4875_v7 = vld [vmem:[%s6031_s1 + $0x298] sm:$0xff]  }
 0x171   :  { %4425 = vmatpush3.bf16.msra.mxu1 %v4835_v5  ;;  %v908_v21 = vpack.c.bf16 %v5438_v15, %v5432_v11  ;;  %v2866_v11 = vld [vmem:[%s6032_s5 + $0x10] sm:$0xff]  ;;  %v2867_v12 = vld [vmem:[%s6032_s5 + $0x18] sm:$0xff]  ;;  %v2868_v15 = vld [vmem:[%s6032_s5 + $0x20] sm:$0xff] }
 0x172   :  { %4430 = vmatprep.subr.bf16.mxu1 %v4836_v8 }
 0x174   :  { %4427 = vmatmul.mubr.msk.bf16.vlgmr.msra.gmra.mrb[0].mxu1 %vm957_vm1, %v893_v10 }
 0x175   :  { %4431 = vmatpush3.bf16.msra.mxu1 %v4836_v8  ;;  %4438 = vmatprep.mubr.msk.bf16.mxu1 %vm957_vm1, %v894_v20  ;;  %v5453_v29 = vpop.f32.mrb[76].mxu0  ;;  %v4840_v20 = vld [vmem:[%s6031_s1 + $0x180] sm:$0xff]   ;;  %v4842_v8 = vld [vmem:[%s6031_s1 + $0x190] sm:$0xff]  }
 0x176   :  { %4432 = vmatprep.subr.bf16.mxu1 %v4837_v23  ;;  %v5458_v37 = vpop.f32.mrb[77].mxu0 }
 0x177   :  { %v5460_v39 = vpop.f32.mrb[78].mxu0 }
 0x178   :  { %v911_v6 = vpack.c.bf16 %v5460_v39, %v5453_v29  ;;  %v5464_v9 = vpop.f32.mrb[79].mxu0  ;;  %v2871_v39 = vld [vmem:[%s6032_s5 + $0x38] sm:$0xff] }
 0x179   :  { %4433 = vmatpush3.bf16.msra.mxu1 %v4837_v23  ;;  %v910_v10 = vpack.c.bf16 %v5464_v9, %v5458_v37  ;;  %v2870_v37 = vld [vmem:[%s6032_s5 + $0x30] sm:$0xff]  ;;  %v2872_v9 = vld [vmem:[%s6032_s5 + $0x40] sm:$0xff] }
 0x17a   :  { %4434 = vmatprep.subr.bf16.mxu1 %v4838_v31 }
 0x17d   :  { %4435 = vmatpush3.bf16.msra.mxu1 %v4838_v31  ;;  %v5471_v19 = vpop.f32.mrb[80].mxu0 }
 0x17e   :  { %4436 = vmatprep.subr.bf16.mxu1 %v4839_v16  ;;  %v5476_v45 = vpop.f32.mrb[81].mxu0 }
 0x17f   :  { %v5478_v47 = vpop.f32.mrb[82].mxu0 }
 0x180   :  { %v913_v53 = vpack.c.bf16 %v5478_v47, %v5471_v19  ;;  %v5482_v55 = vpop.f32.mrb[83].mxu0  ;;  %v2875_v47 = vld [vmem:[%s6032_s5 + $0x58] sm:$0xff] }
 0x181   :  { %4437 = vmatpush3.bf16.msra.mxu1 %v4839_v16  ;;  %v912_v61 = vpack.c.bf16 %v5482_v55, %v5476_v45  ;;  %v2864_v16 = vld [vmem:[%s6032_s5] sm:$0xff]  ;;  %v2874_v45 = vld [vmem:[%s6032_s5 + $0x50] sm:$0xff] }
 0x182   :  { %4442 = vmatprep.subr.bf16.mxu1 %v4840_v20  ;;  %v2876_v55 = vld [vmem:[%s6032_s5 + $0x60] sm:$0xff] }
 0x184   :  { %4439 = vmatmul.mubr.msk.bf16.vlgmr.msra.gmra.mrb[0].mxu1 %vm957_vm1, %v895_v18 }
 0x185   :  { %4443 = vmatpush3.bf16.msra.mxu1 %v4840_v20  ;;  %4450 = vmatprep.mubr.msk.bf16.mxu1 %vm957_vm1, %v896_v28  ;;  %v5497_v5 = vpop.f32.mrb[84].mxu0  ;;  %v4845_v28 = vld [vmem:[%s6031_s1 + $0x1a8] sm:$0xff]  }
 0x186   :  { %4444 = vmatprep.subr.bf16.mxu1 %v4841_v0  ;;  %v5502_v23 = vpop.f32.mrb[85].mxu0  ;;  %v2865_v20 = vld [vmem:[%s6032_s5 + $0x8] sm:$0xff] }
 0x187   :  { %v5504_v31 = vpop.f32.mrb[86].mxu0 }
 0x188   :  { %v915_v14 = vpack.c.bf16 %v5504_v31, %v5497_v5  ;;  %v5508_v17 = vpop.f32.mrb[87].mxu0  ;;  %v4891_v5 = vld [vmem:[%s6035_s3 + $0x34] ss:$8 sps:$4 sm:$0xff]   ;;  %v4889_v31 = vld [vmem:[%s6035_s3 + $0x30] ss:$8 sps:$4 sm:$0xff]  }
 0x189   :  { %4445 = vmatpush3.bf16.msra.mxu1 %v4841_v0  ;;  %v914_v18 = vpack.c.bf16 %v5508_v17, %v5502_v23  ;;  %v4850_v0 = vld [vmem:[%s6031_s1 + $0x1d0] sm:$0xff]   ;;  %v4880_v23 = vld [vmem:[%s6035_s3] ss:$8 sps:$4 sm:$0xff]  }
 0x18a   :  { %4446 = vmatprep.subr.bf16.mxu1 %v4842_v8  ;;  %v4885_v17 = vld [vmem:[%s6035_s3 + $0x14] ss:$8 sps:$4 sm:$0xff]  }
 0x18d   :  { %4447 = vmatpush3.bf16.msra.mxu1 %v4842_v8  ;;  %v4851_v8 = vld [vmem:[%s6031_s1 + $0x1d8] sm:$0xff]  }
 0x18e   :  { %4448 = vmatprep.subr.bf16.mxu1 %v4843_v24 }
 0x191   :  { %4449 = vmatpush3.bf16.msra.mxu1 %v4843_v24  ;;  %v4900_v24 = vmov 0.0  }
 0x192   :  { %4454 = vmatprep.subr.bf16.mxu1 %v4844_v27  ;;  %4582 = vmatprep.mubr.msk.f32.mxu0 %vm4899_vm2, %v4900_v24 }
 0x194   :  { %4451 = vmatmul.mubr.msk.bf16.vlgmr.msra.gmra.mrb[0].mxu1 %vm957_vm1, %v897_v26  ;;  %v5539_v26 = vpack.c.bf16 %v2865_v20, %v2864_v16  ;;  %v2879_v16 = vld [vmem:[%s6032_s5 + $0x78] sm:$0xff] }
 0x195   :  { %4455 = vmatpush3.bf16.msra.mxu1 %v4844_v27  ;;  %4462 = vmatprep.mubr.msk.bf16.mxu1 %vm957_vm1, %v898_v36  ;;  %v4849_v36 = vld [vmem:[%s6031_s1 + $0x1c8] sm:$0xff]  }
 0x196   :  { %4456 = vmatprep.subr.bf16.mxu1 %v4845_v28  ;;  %4604 = vmatpush3.bf16.msra.mxu0 %v5539_v26 }
 0x197   :  { %4605 = vmatprep.subr.bf16.mxu0 %v4898_v25 }
 0x199   :  { %4457 = vmatpush3.bf16.msra.mxu1 %v4845_v28  ;;  %v2878_v28 = vld [vmem:[%s6032_s5 + $0x70] sm:$0xff] }
 0x19a   :  { %4458 = vmatprep.subr.bf16.mxu1 %v4846_v22  ;;  %v5765_v20 = vpack.c.bf16 %v2879_v16, %v2878_v28  ;;  %v4877_v16 = vld [vmem:[%s6034_s4 + $0x8] sm:$0xff]  }
 0x19d   :  { %4459 = vmatpush3.bf16.msra.mxu1 %v4846_v22 }
 0x19e   :  { %4460 = vmatprep.subr.bf16.mxu1 %v4847_v32 }
 0x1a1   :  { %4461 = vmatpush3.bf16.msra.mxu1 %v4847_v32 }
 0x1a2   :  { %4466 = vmatprep.subr.bf16.mxu1 %v4848_v35 }
 0x1a4   :  { %4463 = vmatmul.mubr.msk.bf16.vlgmr.msra.gmra.mrb[0].mxu1 %vm957_vm1, %v899_v34  ;;  %v4854_v34 = vld [vmem:[%s6031_s1 + $0x1f0] sm:$0xff]  }
 0x1a5   :  { %4467 = vmatpush3.bf16.msra.mxu1 %v4848_v35  ;;  %4474 = vmatprep.mubr.msk.bf16.mxu1 %vm957_vm1, %v900_v44  ;;  %v4860_v44 = vld [vmem:[%s6031_s1 + $0x220] sm:$0xff]  }
 0x1a6   :  { %4468 = vmatprep.subr.bf16.mxu1 %v4849_v36 }
 0x1a9   :  { %4469 = vmatpush3.bf16.msra.mxu1 %v4849_v36 }
 0x1aa   :  { %4470 = vmatprep.subr.bf16.mxu1 %v4850_v0 }
 0x1ad   :  { %4471 = vmatpush3.bf16.msra.mxu1 %v4850_v0 }
 0x1ae   :  { %4472 = vmatprep.subr.bf16.mxu1 %v4851_v8 }
 0x1b1   :  { %4473 = vmatpush3.bf16.msra.mxu1 %v4851_v8 }
 0x1b2   :  { %4478 = vmatprep.subr.bf16.mxu1 %v4852_v30 }
 0x1b4   :  { %4475 = vmatmul.mubr.msk.bf16.vlgmr.msra.gmra.mrb[0].mxu1 %vm957_vm1, %v901_v42  ;;  %v4858_v42 = vld [vmem:[%s6031_s1 + $0x210] sm:$0xff]  }
 0x1b5   :  { %4479 = vmatpush3.bf16.msra.mxu1 %v4852_v30  ;;  %4486 = vmatprep.mubr.msk.bf16.mxu1 %vm957_vm1, %v902_v52  ;;  %v4862_v52 = vld [vmem:[%s6031_s1 + $0x230] sm:$0xff]  }
 0x1b6   :  { %4480 = vmatprep.subr.bf16.mxu1 %v4853_v33 }
 0x1b9   :  { %4481 = vmatpush3.bf16.msra.mxu1 %v4853_v33 }
 0x1ba   :  { %4482 = vmatprep.subr.bf16.mxu1 %v4854_v34 }
 0x1bd   :  { %4483 = vmatpush3.bf16.msra.mxu1 %v4854_v34 }
 0x1be   :  { %4484 = vmatprep.subr.bf16.mxu1 %v4855_v40 }
 0x1c1   :  { %4485 = vmatpush3.bf16.msra.mxu1 %v4855_v40 }
 0x1c2   :  { %4490 = vmatprep.subr.bf16.mxu1 %v4856_v38 }
 0x1c4   :  { %4487 = vmatmul.mubr.msk.bf16.vlgmr.msra.gmra.mrb[0].mxu1 %vm957_vm1, %v903_v50 }
 0x1c5   :  { %4491 = vmatpush3.bf16.msra.mxu1 %v4856_v38  ;;  %4498 = vmatprep.mubr.msk.bf16.mxu1 %vm957_vm1, %v904_v60  ;;  %v4868_v60 = vld [vmem:[%s6031_s1 + $0x260] sm:$0xff]  }
 0x1c6   :  { %4492 = vmatprep.subr.bf16.mxu1 %v4857_v41 }
 0x1c9   :  { %4493 = vmatpush3.bf16.msra.mxu1 %v4857_v41 }
 0x1ca   :  { %4494 = vmatprep.subr.bf16.mxu1 %v4858_v42 }
 0x1cd   :  { %4495 = vmatpush3.bf16.msra.mxu1 %v4858_v42 }
 0x1ce   :  { %4496 = vmatprep.subr.bf16.mxu1 %v4859_v43 }
 0x1cf   :  { %v5609_v46 = vpop.f32.mrb[88].mxu0 }
 0x1d0   :  { %v5611_v48 = vpop.f32.mrb[89].mxu0 }
 0x1d1   :  { %v5613_v49 = vpop.f32.mrb[90].mxu0  ;;  %4497 = vmatpush3.bf16.msra.mxu1 %v4859_v43 }
 0x1d2   :  { %v5615_v50 = vpop.f32.mrb[91].mxu0  ;;  %4502 = vmatprep.subr.bf16.mxu1 %v4860_v44 }
 0x1d4   :  { %4499 = vmatmul.mubr.msk.bf16.vlgmr.msra.gmra.mrb[0].mxu1 %vm957_vm1, %v905_v58  ;;  %v4866_v58 = vld [vmem:[%s6031_s1 + $0x250] sm:$0xff]  }
 0x1d5   :  { %4503 = vmatpush3.bf16.msra.mxu1 %v4860_v44  ;;  %4510 = vmatprep.mubr.msk.bf16.mxu1 %vm957_vm1, %v906_v2  ;;  %v4874_v2 = vld [vmem:[%s6031_s1 + $0x290] sm:$0xff]  }
 0x1d6   :  { %4504 = vmatprep.subr.bf16.mxu1 %v4861_v51 }
 0x1d9   :  { %4505 = vmatpush3.bf16.msra.mxu1 %v4861_v51 }
 0x1da   :  { %4506 = vmatprep.subr.bf16.mxu1 %v4862_v52 }
 0x1dd   :  { %4507 = vmatpush3.bf16.msra.mxu1 %v4862_v52 }
 0x1de   :  { %4508 = vmatprep.subr.bf16.mxu1 %v4863_v56 }
 0x1e1   :  { %4509 = vmatpush3.bf16.msra.mxu1 %v4863_v56 }
 0x1e2   :  { %4514 = vmatprep.subr.bf16.mxu1 %v4864_v54 }
 0x1e4   :  { %4511 = vmatmul.mubr.msk.bf16.vlgmr.msra.gmra.mrb[0].mxu1 %vm957_vm1, %v907_v62  ;;  %v4872_v62 = vld [vmem:[%s6031_s1 + $0x280] sm:$0xff]  }
 0x1e5   :  { %4515 = vmatpush3.bf16.msra.mxu1 %v4864_v54  ;;  %4522 = vmatprep.mubr.msk.bf16.mxu1 %vm957_vm1, %v908_v21  ;;  %v2869_v21 = vld [vmem:[%s6032_s5 + $0x28] sm:$0xff] }
 0x1e6   :  { %4516 = vmatprep.subr.bf16.mxu1 %v4865_v57  ;;  %v5714_v29 = vpack.c.bf16 %v2869_v21, %v2868_v15 }
 0x1e9   :  { %4517 = vmatpush3.bf16.msra.mxu1 %v4865_v57 }
 0x1ea   :  { %4518 = vmatprep.subr.bf16.mxu1 %v4866_v58 }
 0x1ed   :  { %4519 = vmatpush3.bf16.msra.mxu1 %v4866_v58 }
 0x1ee   :  { %4520 = vmatprep.subr.bf16.mxu1 %v4867_v59 }
 0x1f1   :  { %4521 = vmatpush3.bf16.msra.mxu1 %v4867_v59 }
 0x1f2   :  { %4526 = vmatprep.subr.bf16.mxu1 %v4868_v60 }
 0x1f4   :  { %4523 = vmatmul.mubr.msk.bf16.vlgmr.msra.gmra.mrb[0].mxu1 %vm957_vm1, %v909_v13  ;;  %v5704_v13 = vpack.c.bf16 %v2867_v12, %v2866_v11 }
 0x1f5   :  { %4527 = vmatpush3.bf16.msra.mxu1 %v4868_v60  ;;  %4534 = vmatprep.mubr.msk.bf16.mxu1 %vm957_vm1, %v910_v10  ;;  %v2873_v10 = vld [vmem:[%s6032_s5 + $0x48] sm:$0xff] }
 0x1f6   :  { %4528 = vmatprep.subr.bf16.mxu1 %v4869_v63  ;;  %4607 = vmatpush3.bf16.msra.mxu0 %v5704_v13  ;;  %v5734_v19 = vpack.c.bf16 %v2873_v10, %v2872_v9 }
 0x1f7   :  { %4608 = vmatprep.subr.bf16.mxu0 %v4898_v25 }
 0x1f9   :  { %4529 = vmatpush3.bf16.msra.mxu1 %v4869_v63 }
 0x1fa   :  { %4530 = vmatprep.subr.bf16.mxu1 %v4870_v3  ;;  %4610 = vmatpush3.bf16.msra.mxu0 %v5714_v29 }
 0x1fb   :  { %4611 = vmatprep.subr.bf16.mxu0 %v4898_v25 }
 0x1fd   :  { %4531 = vmatpush3.bf16.msra.mxu1 %v4870_v3 }
 0x1fe   :  { %4532 = vmatprep.subr.bf16.mxu1 %v4871_v4 }
 0x201   :  { %4533 = vmatpush3.bf16.msra.mxu1 %v4871_v4 }
 0x202   :  { %4538 = vmatprep.subr.bf16.mxu1 %v4872_v62 }
 0x204   :  { %4535 = vmatmul.mubr.msk.bf16.vlgmr.msra.gmra.mrb[0].mxu1 %vm957_vm1, %v911_v6  ;;  %v5724_v6 = vpack.c.bf16 %v2871_v39, %v2870_v37  ;;  %v2956_v39 = vld [vmem:[%s6036_s7] ss:$0 sm:$0xff] }
 0x205   :  { %4539 = vmatpush3.bf16.msra.mxu1 %v4872_v62  ;;  %4546 = vmatprep.mubr.msk.bf16.mxu1 %vm957_vm1, %v912_v61  ;;  %v2877_v61 = vld [vmem:[%s6032_s5 + $0x68] sm:$0xff]  ;;  %v5800_v62 = vld [vmem:[%s6033_s6] sm:$0xff] }
 0x206   :  { %4540 = vmatprep.subr.bf16.mxu1 %v4873_v1  ;;  %4613 = vmatpush3.bf16.msra.mxu0 %v5724_v6  ;;  %v5755_v27 = vpack.c.bf16 %v2877_v61, %v2876_v55 }
 0x207   :  { %4614 = vmatprep.subr.bf16.mxu0 %v4898_v25 }
 0x209   :  { %4541 = vmatpush3.bf16.msra.mxu1 %v4873_v1  ;;  %v4876_v1 = vld [vmem:[%s6034_s4] sm:$0xff]  }
 0x20a   :  { %4542 = vmatprep.subr.bf16.mxu1 %v4874_v2  ;;  %4616 = vmatpush3.bf16.msra.mxu0 %v5734_v19 }
 0x20b   :  { %4617 = vmatprep.subr.bf16.mxu0 %v4898_v25 }
 0x20d   :  { %4543 = vmatpush3.bf16.msra.mxu1 %v4874_v2 }
 0x20e   :  { %4544 = vmatprep.subr.bf16.mxu1 %v4875_v7 }
 0x211   :  { %4545 = vmatpush3.bf16.msra.mxu1 %v4875_v7 }
 0x214   :  { %4547 = vmatmul.mubr.msk.bf16.vlgmr.msra.gmra.mrb[0].mxu1 %vm957_vm1, %v913_v53  ;;  %v5744_v53 = vpack.c.bf16 %v2875_v47, %v2874_v45  ;;  %v2960_v47 = vld [vmem:[%s6036_s7 + $0x1] ss:$0 sm:$0xff] }
 0x216   :  { %4619 = vmatpush3.bf16.msra.mxu0 %v5744_v53 }
 0x217   :  { %4620 = vmatprep.subr.bf16.mxu0 %v4898_v25 }
 0x21a   :  { %4622 = vmatpush3.bf16.msra.mxu0 %v5755_v27 }
 0x21b   :  { %4623 = vmatprep.subr.bf16.mxu0 %v4898_v25 }
 0x21e   :  { %4625 = vmatpush3.bf16.msra.mxu0 %v5765_v20 }
 0x21f   :  { %4585 = vmatprep.subr.mxu0 %v4900_v24 }
 0x2e7   :  { %v4548_v22 = vpop.f32.mrb[0].mxu1 }
 0x2e8   :  { %v5771_v32 = vadd.f32 %v4548_v22, %v5609_v46  ;;  %v2821_v35 = vpop.f32.mrb[1].mxu1 }
 0x2e9   :  { %v5774_v36 = vadd.f32 %v2821_v35, %v5611_v48  ;;  %v4549_v0 = vpop.f32.mrb[2].mxu1  ;;  %v4878_v35 = vld [vmem:[%s6034_s4 + $0x10] sm:$0xff]  }
 0x2ea   :  { %v5777_v8 = vadd.f32 %v4549_v0, %v5613_v49  ;;  %v2824_v30 = vpop.f32.mrb[3].mxu1  ;;  %v2851_v38 = vmul.f32 %v5771_v32, %v5771_v32  ;;  %v4879_v0 = vld [vmem:[%s6034_s4 + $0x18] sm:$0xff]  }
 0x2eb   :  { %v5780_v33 = vadd.f32 %v2824_v30, %v5615_v50  ;;  %v2849_v25 = vmul.f32 %v5774_v36, %v5774_v36  ;;  %v4882_v30 = vld [vmem:[%s6035_s3 + $0x4] ss:$8 sps:$4 sm:$0xff]  }
 0x2ec   :  { %v2852_v43 = vmul.f32 %v5777_v8, %v5777_v8 }
 0x2ed   :  { %v2840_v34 = vadd.f32 %v5780_v33, %v5774_v36  ;;  %v2850_v40 = vmul.f32 %v5780_v33, %v5780_v33 }
 0x2ef   :  { %v2841_v41 = vadd.f32 %v5771_v32, %v2840_v34  ;;  %v2853_v42 = vadd.f32 %v2850_v40, %v2849_v25  ;;  %v4888_v25 = vld [vmem:[%s6035_s3 + $0x24] ss:$8 sps:$4 sm:$0xff]   ;;  %v4886_v34 = vld [vmem:[%s6035_s3 + $0x20] ss:$8 sps:$4 sm:$0xff]  }
 0x2f0   :  { %v3334_v40 = vld [vmem:[%s6032_s5 + $0x80] sm:$0xff] }
 0x2f1   :  { %v2842_v44 = vadd.f32 %v5777_v8, %v2841_v41  ;;  %v2854_v46 = vadd.f32 %v2853_v42, %v2851_v38  ;;  %v3335_v38 = vld [vmem:[%s6032_s5 + $0x88] sm:$0xff]  ;;  %v4896_v41 = vld [vmem:[%s6029_s0] sm:$0xff]  }
 0x2f2   :  { %v4626_v42 = vpack.c.bf16 %v3335_v38, %v3334_v40 }
 0x2f3   :  { %v2843_v48 = vrot.slane %v2842_v44, 4  ;;  %v2855_v49 = vadd.f32 %v2854_v46, %v2852_v43  ;;  %v3336_v43 = vld [vmem:[%s6032_s5 + $0x90] sm:$0xff] }
 0x2f5   :  { %v2844_v50 = vadd.f32 %v2843_v48, %v2842_v44  ;;  %v2856_v51 = vrot.slane %v2855_v49, 4  ;;  %v3337_v44 = vld [vmem:[%s6032_s5 + $0x98] sm:$0xff]  ;;  %v3338_v48 = vld [vmem:[%s6032_s5 + $0xa0] sm:$0xff] }
 0x2f6   :  { %v4630_v46 = vpack.c.bf16 %v3337_v44, %v3336_v43 }
 0x2f7   :  { %v2845_v52 = vrot.slane %v2844_v50, 2  ;;  %v2857_v56 = vadd.f32 %v2856_v51, %v2855_v49  ;;  %v3341_v51 = vld [vmem:[%s6032_s5 + $0xb8] sm:$0xff] }
 0x2f9   :  { %v2846_v54 = vadd.f32 %v2845_v52, %v2844_v50  ;;  %v2858_v57 = vrot.slane %v2857_v56, 2  ;;  %v4897_v50 = vld [vmem:[%s6029_s0 + $0x8] sm:$0xff]  }
 0x2fb   :  { %v2847_v58 = vrot.slane %v2846_v54, 1  ;;  %v2859_v59 = vadd.f32 %v2858_v57, %v2857_v56  ;;  %v3342_v56 = vld [vmem:[%s6032_s5 + $0xc0] sm:$0xff]  ;;  %v3344_v57 = vld [vmem:[%s6032_s5 + $0xd0] sm:$0xff] }
 0x2fd   :  { %v2860_v60 = vrot.slane %v2859_v59, 1  ;;  %v2848_v63 = vadd.f32 %v2847_v58, %v2846_v54 }
 0x2ff   :  { %v2861_v3 = vadd.f32 %v2860_v60, %v2859_v59  ;;  %v3346_v59 = vld [vmem:[%s6032_s5 + $0xe0] sm:$0xff]  ;;  %v3347_v60 = vld [vmem:[%s6032_s5 + $0xe8] sm:$0xff] }
 0x301   :  { %v2863_v4 = vsel %vm2862_vm3, %v2848_v63, %v2861_v3  ;;  %v4650_v63 = vpack.c.bf16 %v3347_v60, %v3346_v59  ;;  %v3349_v3 = vld [vmem:[%s6032_s5 + $0xf8] sm:$0xff] }
 0x302   :  { %4583 = vmatmul.mubr.f32.vlgmr.msra.gmra.mrb[92].mxu0 %v2863_v4 }
 0x303   :  { %4587 = vmatprep.mubr.msk.f32.mxu0 %vm4899_vm2, %v4900_v24  ;;  %4586 = vmatpush3.msra.mxu0 %v5800_v62 }
 0x304   :  { %4590 = vmatprep.subr.bf16.mxu0 %v4876_v1 }
 0x3d5   :  { %v2946_v2 = vpop.f32.mrb[92].mxu0 }
 0x3d6   :  { %v2950_v7 = vmul.f32 0.001953125, %v2946_v2  ;;  %v4584_v11 = vpop.f32.mrb[93].mxu0 }
 0x3d8   :  { %v2951_v12 = vmul.f32 %v2950_v7, %v2950_v7 }
 0x3da   :  { %v2953_v15 = vrot.slane %v2951_v12, 7 }
 0x3dc   :  { %v2955_v21 = vsub.f32 %v2950_v7, %v2953_v15 }
 0x3de   :  { %v2957_v37 = vadd.f32 1e-05, %v2955_v21 }
 0x3e0   :  { %4892 = vrsqrt.f32 %v2957_v37 }
 0x3ea   :  { %v4893_v9 = vpop.eup %4892 }
 0x3eb   :  { %v2959_v10 = vmul.f32 %v4893_v9, %v2956_v39 }
 0x3ed   :  { %v2962_v45 = vrot.slane %v2959_v10, 1 }
 0x3ef   :  { %v2964_v55 = vmul.f32 %v2962_v45, %v2950_v7 }
 0x3f1   :  { %v2965_v61 = vsub.f32 %v2960_v47, %v2964_v55 }
 0x3f3   :  { %v2967_v28 = vrot.slane %v2965_v61, 7 }
 0x3f5   :  { %v2969_v22 = vsel %vm2862_vm3, %v2962_v45, %v2967_v28 }
 0x3f6   :  { %4588 = vmatmul.mubr.msk.f32.vlgmr.msra.gmra.mrb[94].mxu0 %vm2971_vm4, %v2969_v22 }
 0x3f7   :  { %4591 = vmatpush3.bf16.msra.mxu0 %v4876_v1  ;;  %4598 = vmatprep.mubr.msk.bf16.mxu0 %vm957_vm1, %v914_v18  ;;  %v4883_v18 = vld [vmem:[%s6035_s3 + $0x10] ss:$8 sps:$4 sm:$0xff]   ;;  %v3045_v1 = vlaneseq }
 0x3f8   :  { %4592 = vmatprep.subr.bf16.mxu0 %v4877_v16 }
 0x3f9   :  { %v3046_v2 = vshrl.u32 %v3045_v1, 7 }
 0x3fb   :  { %4593 = vmatpush3.bf16.msra.mxu0 %v4877_v16  ;;  %v5918_v7 = vsub.s32 0, %v3046_v2  ;;  %v5920_v11 = vsub.s32 1, %v3046_v2 }
 0x3fc   :  { %4594 = vmatprep.subr.bf16.mxu0 %v4878_v35 }
 0x3ff   :  { %4595 = vmatpush3.bf16.msra.mxu0 %v4878_v35 }
 0x400   :  { %4596 = vmatprep.subr.bf16.mxu0 %v4879_v0 }
 0x403   :  { %4597 = vmatpush3.bf16.msra.mxu0 %v4879_v0 }
 0x404   :  { %3219 = vmatprep.subr.bf16.mxu0 %v4882_v30 }
 0x406   :  { %4599 = vmatmul.mubr.msk.bf16.vlgmr.msra.gmra.mrb[96].mxu0 %vm957_vm1, %v915_v14  ;;  %v4901_v14 = vmov 0  }
 0x407   :  { %3220 = vmatpush1.bf16.msra.mxu0 %v4880_v23  ;;  %3251 = vmatprep.mubr.bf16.mxu0 %v4901_v14 }
 0x408   :  { %3221 = vmatprep.subr.bf16.mxu0 %v4885_v17 }
 0x40b   :  { %3222 = vmatpush1.bf16.msra.mxu0 %v4883_v18 }
 0x40c   :  { %3223 = vmatprep.subr.bf16.mxu0 %v4888_v25 }
 0x40f   :  { %3224 = vmatpush1.bf16.msra.mxu0 %v4886_v34 }
 0x410   :  { %3225 = vmatprep.subr.bf16.mxu0 %v4891_v5 }
 0x413   :  { %3226 = vmatpush1.bf16.msra.mxu0 %v4889_v31 }
 0x414   :  { %4627 = vmatprep.subr.bf16.mxu0 %v4626_v42 }
 0x416   :  { %3971 = vmatmul.mubr.msk.bf16.vlgmr.msra.gmra.mrb[100].mxu0 %vm957_vm1, %v4896_v41 }
 0x417   :  { %3261 = vmatprep.mubr.bf16.mxu0 %v4901_v14  ;;  %4629 = vmatpush3.bf16.msra.mxu0 %v5539_v26  ;;  %v3339_v26 = vld [vmem:[%s6032_s5 + $0xa8] sm:$0xff] }
 0x418   :  { %4631 = vmatprep.subr.bf16.mxu0 %v4630_v46  ;;  %v4634_v49 = vpack.c.bf16 %v3339_v26, %v3338_v48 }
 0x41b   :  { %4633 = vmatpush3.bf16.msra.mxu0 %v5704_v13  ;;  %v3340_v13 = vld [vmem:[%s6032_s5 + $0xb0] sm:$0xff] }
 0x41c   :  { %4635 = vmatprep.subr.bf16.mxu0 %v4634_v49  ;;  %v4638_v52 = vpack.c.bf16 %v3341_v51, %v3340_v13 }
 0x41e   :  { %3972 = vmatmul.mubr.msk.bf16.gmra.mrb[104].mxu0 %vm957_vm1, %v4897_v50 }
 0x41f   :  { %4637 = vmatpush3.bf16.msra.mxu0 %v5714_v29  ;;  %v3343_v29 = vld [vmem:[%s6032_s5 + $0xc8] sm:$0xff] }
 0x420   :  { %4639 = vmatprep.subr.bf16.mxu0 %v4638_v52  ;;  %v4642_v54 = vpack.c.bf16 %v3343_v29, %v3342_v56 }
 0x423   :  { %4641 = vmatpush3.bf16.msra.mxu0 %v5724_v6  ;;  %v3345_v6 = vld [vmem:[%s6032_s5 + $0xd8] sm:$0xff] }
 0x424   :  { %4643 = vmatprep.subr.bf16.mxu0 %v4642_v54  ;;  %v4646_v58 = vpack.c.bf16 %v3345_v6, %v3344_v57 }
 0x427   :  { %4645 = vmatpush3.bf16.msra.mxu0 %v5734_v19  ;;  %v3348_v19 = vld [vmem:[%s6032_s5 + $0xf0] sm:$0xff] }
 0x428   :  { %4647 = vmatprep.subr.bf16.mxu0 %v4646_v58  ;;  %v4654_v4 = vpack.c.bf16 %v3349_v3, %v3348_v19 }
 0x42b   :  { %4649 = vmatpush3.bf16.msra.mxu0 %v5744_v53 }
 0x42c   :  { %4651 = vmatprep.subr.bf16.mxu0 %v4650_v63 }
 0x42f   :  { %4653 = vmatpush3.bf16.msra.mxu0 %v5755_v27 }
 0x430   :  { %4655 = vmatprep.subr.bf16.mxu0 %v4654_v4 }
 0x433   :  { %4657 = vmatpush3.bf16.msra.mxu0 %v5765_v20 }
 0x4c9   :  { %v3041_v12 = vpop.f32.mrb[94].mxu0 }
 0x4ca   :  { %v3048_v15 = vrot.slane %v3041_v12, %v5918_v7  ;;  %v4589_v21 = vpop.f32.mrb[95].mxu0  ;;  %v3056_v37 = vrot.slane %v3041_v12, %v5920_v11 }
 0x4cc   :  { %v3049_v53 = vmul.f32 %v5774_v36, %v3048_v15  ;;  %v3050_v39 = vmul.f32 %v5780_v33, %v3048_v15  ;;  %v3051_v27 = vmul.f32 %v5771_v32, %v3048_v15  ;;  %v3052_v20 = vmul.f32 %v5777_v8, %v3048_v15 }
 0x4ce   :  { %v3057_v9 = vadd.f32 %v3056_v37, %v3049_v53  ;;  %v3058_v10 = vadd.f32 %v3056_v37, %v3050_v39  ;;  %v3059_v45 = vadd.f32 %v3056_v37, %v3051_v27  ;;  %v3060_v47 = vadd.f32 %v3056_v37, %v3052_v20 }
 0x4d0   :  { %v5928_v55 = vmax.f32 %v3057_v9, 0.0  ;;  %v5930_v61 = vmax.f32 %v3058_v10, 0.0  ;;  %v5932_v28 = vmax.f32 %v3059_v45, 0.0  ;;  %v5934_v16 = vmax.f32 %v3060_v47, 0.0 }
 0x4d2   :  { %v3272_v36 = vadd.f32 %v5930_v61, %v5928_v55  ;;  %v3290_v32 = vmul.f32 %v5928_v55, %v5928_v55  ;;  %v3292_v8 = vmul.f32 %v5930_v61, %v5930_v61  ;;  %v3294_v22 = vmul.f32 %v5932_v28, %v5932_v28 }
 0x4d3   :  { %v3296_v0 = vmul.f32 %v5934_v16, %v5934_v16 }
 0x4d4   :  { %v3273_v33 = vadd.f32 %v3272_v36, %v5932_v28  ;;  %v3298_v35 = vadd.f32 %v3292_v8, %v3290_v32  ;;  %v3441_v8 = vld [vmem:[%s6033_s6 + $0x8] sm:$0xff] }
 0x4d6   :  { %v3299_v30 = vadd.f32 %v3298_v35, %v3294_v22  ;;  %v3274_v23 = vadd.f32 %v3273_v33, %v5934_v16  ;;  %v3443_v33 = vld [vmem:[%s6033_s6 + $0x18] sm:$0xff] }
 0x4d7   :  { %v4658_v22 = vpack.c.bf16 %v3443_v33, %v3441_v8 }
 0x4d8   :  { %v3300_v17 = vadd.f32 %v3299_v30, %v3296_v0  ;;  %v3275_v14 = vrot.slane %v3274_v23, 4 }
 0x4d9   :  { %v5948_v18 = vpop.f32.mrb[96].mxu0  ;;  %4659 = vmatprep.subr.bf16.mxu0 %v4658_v22 }
 0x4da   :  { %v5950_v25 = vpop.f32.mrb[97].mxu0  ;;  %v3301_v34 = vrot.slane %v3300_v17, 4  ;;  %v3295_v43 = vmul.f32 %v5948_v18, %v5948_v18  ;;  %v3276_v48 = vadd.f32 %v3275_v14, %v3274_v23 }
 0x4db   :  { %v5952_v5 = vpop.f32.mrb[98].mxu0  ;;  %v3291_v40 = vmul.f32 %v5950_v25, %v5950_v25 }
 0x4dc   :  { %v5954_v31 = vpop.f32.mrb[99].mxu0  ;;  %v3302_v42 = vadd.f32 %v3301_v34, %v3300_v17  ;;  %v3297_v26 = vmul.f32 %v5952_v5, %v5952_v5  ;;  %v3277_v56 = vrot.slane %v3276_v48, 2 }
 0x4dd   :  { %v3281_v38 = vadd.f32 %v5954_v31, %v5950_v25  ;;  %v3293_v41 = vmul.f32 %v5954_v31, %v5954_v31 }
 0x4de   :  { %v3303_v13 = vrot.slane %v3302_v42, 2  ;;  %v3278_v59 = vadd.f32 %v3277_v56, %v3276_v48 }
 0x4df   :  { %v3282_v44 = vadd.f32 %v5948_v18, %v3281_v38  ;;  %v3307_v46 = vadd.f32 %v3293_v41, %v3291_v40  ;;  %v3426_v41 = vld [vmem:[%s6036_s7 + $0x2] ss:$0 sm:$0xff] }
 0x4e0   :  { %v3304_v57 = vadd.f32 %v3303_v13, %v3302_v42  ;;  %v3279_v1 = vrot.slane %v3278_v59, 1 }
 0x4e1   :  { %v3283_v49 = vadd.f32 %v5952_v5, %v3282_v44  ;;  %v3308_v50 = vadd.f32 %v3307_v46, %v3295_v43 }
 0x4e2   :  { %v3305_v19 = vrot.slane %v3304_v57, 1  ;;  %v3280_v37 = vadd.f32 %v3279_v1, %v3278_v59 }
 0x4e3   :  { %v3284_v51 = vrot.slane %v3283_v49, 4  ;;  %v3309_v52 = vadd.f32 %v3308_v50, %v3297_v26  ;;  %v3962_v50 = vld [vmem:[%s6036_s7 + $0x4] ss:$8 sm:$0x3] }
 0x4e4   :  { %v3306_v12 = vadd.f32 %v3305_v19, %v3304_v57  ;;  %v3166_v13 = vrot.slane %v3962_v50, %v5918_v7 }
 0x4e5   :  { %v3285_v29 = vadd.f32 %v3284_v51, %v3283_v49  ;;  %v3310_v54 = vrot.slane %v3309_v52, 4  ;;  %v3170_v51 = vrot.slane %v3962_v50, %v5920_v11 }
 0x4e6   :  { %v3316_v39 = vsel %vm2862_vm3, %v3280_v37, %v3306_v12 }
 0x4e7   :  { %v3286_v6 = vrot.slane %v3285_v29, 2  ;;  %v3311_v58 = vadd.f32 %v3310_v54, %v3309_v52 }
 0x4e9   :  { %v3287_v60 = vadd.f32 %v3286_v6, %v3285_v29  ;;  %v3312_v63 = vrot.slane %v3311_v58, 2  ;;  %v3253_v27 = vpop.f32.mrb[100].mxu0 }
 0x4ea   :  { %v3255_v20 = vpop.f32.mrb[101].mxu0  ;;  %v3254_v52 = vadd.f32 %v3253_v27, %v3166_v13 }
 0x4eb   :  { %v3288_v3 = vrot.slane %v3287_v60, 1  ;;  %v3313_v4 = vadd.f32 %v3312_v63, %v3311_v58  ;;  %v3257_v9 = vpop.f32.mrb[102].mxu0  ;;  %v3256_v56 = vadd.f32 %v3255_v20, %v3170_v51 }
 0x4ec   :  { %v3259_v10 = vpop.f32.mrb[103].mxu0  ;;  %v3258_v29 = vadd.f32 %v3257_v9, %v3166_v13 }
 0x4ed   :  { %v3314_v2 = vrot.slane %v3313_v4, 1  ;;  %v3289_v15 = vadd.f32 %v3288_v3, %v3287_v60  ;;  %v3260_v54 = vadd.f32 %v3259_v10, %v3170_v51 }
 0x4ef   :  { %v3315_v21 = vadd.f32 %v3314_v2, %v3313_v4 }
 0x4f1   :  { %v3317_v53 = vsel %vm2862_vm3, %v3289_v15, %v3315_v21  ;;  %v3263_v45 = vpop.f32.mrb[104].mxu0 }
 0x4f2   :  { %3414 = vmatprep.mubr.f32.mxu0 %v3317_v53  ;;  %v3265_v47 = vpop.f32.mrb[105].mxu0  ;;  %v3264_v6 = vadd.f32 %v3263_v45, %v3166_v13 }
 0x4f3   :  { %3415 = vmatmul.mubr.f32.vlgmr.msra.gmra.mrb[108].mxu0 %v3316_v39  ;;  %v3267_v36 = vpop.f32.mrb[106].mxu0  ;;  %v3266_v58 = vadd.f32 %v3265_v47, %v3170_v51 }
 0x4f4   :  { %3512 = vmatprep.mubr.f32.mxu0 %v4900_v24  ;;  %v3269_v32 = vpop.f32.mrb[107].mxu0  ;;  %v3442_v24 = vld [vmem:[%s6033_s6 + $0x10] sm:$0xff]  ;;  %v3268_v59 = vadd.f32 %v3267_v36, %v3166_v13 }
 0x4f5   :  { %v4660_v35 = vpack.c.bf16 %v3442_v24, %v5800_v62  ;;  %v3430_v62 = vld [vmem:[%s6036_s7 + $0x3] ss:$0 sm:$0xff]  ;;  %v3270_v19 = vadd.f32 %v3269_v32, %v3170_v51 }
 0x4f7   :  { %4661 = vmatpush1.bf16.msra.mxu0 %v4660_v35 }
 0x5c6   :  { %v4203_v0 = vpop.f32.mrb[108].mxu0 }
 0x5c7   :  { %v4204_v30 = vpop.f32.mrb[109].mxu0 }
 0x5c8   :  { %v4205_v23 = vadd.f32 %v4204_v30, %v4203_v0 }
 0x5ca   :  { %v3420_v17 = vmul.f32 0.001953125, %v4205_v23 }
 0x5cc   :  { %v3421_v34 = vmul.f32 %v3420_v17, %v3420_v17 }
 0x5ce   :  { %v3423_v14 = vrot.slane %v3421_v34, 7 }
 0x5d0   :  { %v3425_v40 = vsub.f32 %v3420_v17, %v3423_v14 }
 0x5d2   :  { %v3427_v38 = vadd.f32 1e-05, %v3425_v40 }
 0x5d4   :  { %4894 = vrsqrt.f32 %v3427_v38 }
 0x5de   :  { %v4895_v42 = vpop.eup %4894 }
 0x5df   :  { %v3429_v43 = vmul.f32 %v4895_v42, %v3426_v41 }
 0x5e1   :  { %v3432_v44 = vrot.slane %v3429_v43, 1 }
 0x5e3   :  { %v3434_v46 = vmul.f32 %v3432_v44, %v3420_v17 }
 0x5e5   :  { %v3435_v48 = vsub.f32 %v3430_v62, %v3434_v46 }
 0x5e7   :  { %v3437_v26 = vrot.slane %v3435_v48, 7 }
 0x5e9   :  { %v3439_v49 = vsel %vm2862_vm3, %v3432_v44, %v3437_v26 }
 0x5ea   :  { %3973 = vmatmul.mubr.msk.f32.vlgmr.msra.gmra.mrb[110].mxu0 %vm3444_vm5, %v3439_v49 }
 0x6bd   :  { %v3514_v57 = vpop.f32.mrb[110].mxu0 }
 0x6be   :  { %v3522_v60 = vrot.slane %v3514_v57, %v5918_v7  ;;  %v3516_v63 = vpop.f32.mrb[111].mxu0  ;;  %v3538_v3 = vrot.slane %v3514_v57, %v5920_v11 }
 0x6bf   :  { %v3526_v4 = vrot.slane %v3516_v63, %v5918_v7  ;;  %v3542_v1 = vrot.slane %v3516_v63, %v5920_v11 }
 0x6c0   :  { %v3527_v2 = vmul.f32 %v3522_v60, %v5928_v55  ;;  %v3529_v12 = vmul.f32 %v3522_v60, %v5930_v61  ;;  %v3531_v15 = vmul.f32 %v3522_v60, %v5932_v28  ;;  %v3533_v21 = vmul.f32 %v3522_v60, %v5934_v16 }
 0x6c1   :  { %v3528_v37 = vmul.f32 %v3526_v4, %v5950_v25  ;;  %v3530_v53 = vmul.f32 %v3526_v4, %v5954_v31  ;;  %v3532_v39 = vmul.f32 %v5948_v18, %v3526_v4  ;;  %v3534_v27 = vmul.f32 %v5952_v5, %v3526_v4 }
 0x6c2   :  { %v3543_v20 = vadd.f32 %v3538_v3, %v3527_v2  ;;  %v3545_v7 = vadd.f32 %v3538_v3, %v3529_v12  ;;  %v3547_v9 = vadd.f32 %v3538_v3, %v3531_v15  ;;  %v3549_v11 = vadd.f32 %v3538_v3, %v3533_v21 }
 0x6c3   :  { %v3544_v10 = vadd.f32 %v3542_v1, %v3528_v37  ;;  %v3546_v55 = vadd.f32 %v3542_v1, %v3530_v53  ;;  %v3548_v45 = vadd.f32 %v3542_v1, %v3532_v39  ;;  %v3550_v61 = vadd.f32 %v3542_v1, %v3534_v27 }
 0x6c4   :  { %v3551_v47 = vadd.f32 %v3543_v20, %v3254_v52  ;;  %v3553_v28 = vadd.f32 %v3545_v7, %v3258_v29  ;;  %v3555_v36 = vadd.f32 %v3547_v9, %v3264_v6  ;;  %v3557_v16 = vadd.f32 %v3549_v11, %v3268_v59 }
 0x6c5   :  { %v3552_v32 = vadd.f32 %v3544_v10, %v3256_v56  ;;  %v3554_v25 = vadd.f32 %v3546_v55, %v3260_v54  ;;  %v3556_v8 = vadd.f32 %v3548_v45, %v3266_v58  ;;  %v3558_v31 = vadd.f32 %v3550_v61, %v3270_v19 }
 0x6c6   :  { %v3559_v33 = vmax.f32 %v3551_v47, 0.0  ;;  %v3561_v18 = vmax.f32 %v3553_v28, 0.0  ;;  %v3563_v22 = vmax.f32 %v3555_v36, 0.0  ;;  %v3565_v5 = vmax.f32 %v3557_v16, 0.0 }
 0x6c7   :  { %v3560_v24 = vmax.f32 %v3552_v32, 0.0  ;;  %v3562_v35 = vmax.f32 %v3554_v25, 0.0  ;;  %v3564_v0 = vmax.f32 %v3556_v8, 0.0  ;;  %v3566_v30 = vmax.f32 %v3558_v31, 0.0 }
 0x6c8   :  { %3567 = vst [vmem:[%s6037_s8] sm:$0xff] %v3559_v33  ;;  %3569 = vst [vmem:[%s6037_s8 + $0x10] sm:$0xff] %v3561_v18 }
 0x6c9   :  { %3571 = vst [vmem:[%s6037_s8 + $0x20] sm:$0xff] %v3563_v22  ;;  %3573 = vst [vmem:[%s6037_s8 + $0x30] sm:$0xff] %v3565_v5 }
 0x6ca   :  { %3568 = vst [vmem:[%s6037_s8 + $0x8] sm:$0xff] %v3560_v24  ;;  %3570 = vst [vmem:[%s6037_s8 + $0x18] sm:$0xff] %v3562_v35 }
 0x6cb   :  { %3572 = vst [vmem:[%s6037_s8 + $0x28] sm:$0xff] %v3564_v0  ;;  %3574 = vst [vmem:[%s6037_s8 + $0x38] sm:$0xff] %v3566_v30 }

</bundles_post_ra>
